<compile_context>
chip_gen: v7x
topology: tpu7x:2x2x1
jax: 0.10.0
libtpu: 0.0.40
codegen_flags: <defaults>
</compile_context>

<pallas_src>
import jax
import jax.numpy as jnp
from jax.experimental import pallas as pl
from jax.experimental.pallas import tpu as pltpu

MAX_ORDER = 6
NUM_COEFF = MAX_ORDER                   # n_hidden12
# original: [5000, 4000, 3000, 2000, 1000, 512, 256, 128, 64, 32, 16, 6]
DIMS = [512, 384, 256, 256, 128, 128, 128, 128, 64, 32, 16, NUM_COEFF]
N_LAYERS = len(DIMS) - 1                # 11 linear layers
LANE = 128
B_PAD = max(DIMS[1:])                   # 384: lane width of the bias pack
DATA_N = 500                            # stand-in for the hard-coded 5000-pt grid
EPS = 1e-5
N_DMA = 6                               # W1 chunk0, W1 chunk1, W2, W3, W4, W5-8 slab


def _relu_ln(z, true_dim):
    """relu(z) then LayerNorm over the last dim (weight=1, bias=0, eps=1e-5).

    `true_dim` is the real feature width; trailing lanes beyond it must be
    exactly zero in `z` (guaranteed by zero-padded weights/biases), so the
    sums below only see the real features while the tile stays lane-dense.
    """
    a = jnp.maximum(z, 0.0)
    inv = 1.0 / float(true_dim)
    mu = jnp.sum(a, axis=-1, keepdims=True) * inv
    ms = jnp.sum(a * a, axis=-1, keepdims=True) * inv
    var = jnp.maximum(ms - mu * mu, 0.0)     # biased variance (matches torch LayerNorm)
    return (a - mu) * jax.lax.rsqrt(var + EPS)


def encoder_kernel(x_ref, data_ref, b_ref, wt_ref,
                   w1_hbm, w2_hbm, w3_hbm, w4_hbm, w58_hbm,
                   l11_ref, pred_ref,
                   w1_v, w2_v, w3_v, w4_v, w58_v, sems):
    k1h = DIMS[0] // 2

    # ---- issue all weight DMAs up front; wait right before each use so each
    # ---- transfer hides behind the preceding matmul + LayerNorm. ------------
    cps = [
        pltpu.make_async_copy(w1_hbm.at[pl.ds(0, k1h)],   w1_v.at[pl.ds(0, k1h)],   sems.at[0]),
        pltpu.make_async_copy(w1_hbm.at[pl.ds(k1h, k1h)], w1_v.at[pl.ds(k1h, k1h)], sems.at[1]),
        pltpu.make_async_copy(w2_hbm, w2_v, sems.at[2]),
        pltpu.make_async_copy(w3_hbm, w3_v, sems.at[3]),
        pltpu.make_async_copy(w4_hbm, w4_v, sems.at[4]),
        pltpu.make_async_copy(w58_hbm, w58_v, sems.at[5]),
    ]
    for cp in cps:
        cp.start()

    def bias(i, width):
        return b_ref[i:i + 1, :width]            # [1, width] slice of the bias pack

    # ---- data powers, computed on sublane-dense [rows, 128] tiles; placed
    # ---- early so they overlap the weight DMAs / layer chain. ---------------
    d1 = data_ref[...]
    d2 = d1 * d1
    d3 = d2 * d1
    d4 = d2 * d2
    d5 = d4 * d1

    # ---- layer 1: W1 streamed in two K-chunks -------------------------------
    x = x_ref[...].astype(jnp.bfloat16)
    cps[0].wait()
    z = jnp.dot(x[:, :k1h], w1_v[:k1h, :], preferred_element_type=jnp.float32)
    cps[1].wait()
    z = z + jnp.dot(x[:, k1h:], w1_v[k1h:, :], preferred_element_type=jnp.float32)
    h = _relu_ln(z + bias(0, DIMS[1]), DIMS[1])

    # ---- layers 2..4: individually streamed bf16 weights ---------------------
    for li, (cp, wv) in enumerate(((cps[2], w2_v), (cps[3], w3_v), (cps[4], w4_v)), start=2):
        cp.wait()
        z = jnp.dot(h.astype(jnp.bfloat16), wv[...], preferred_element_type=jnp.float32)
        h = _relu_ln(z + bias(li - 1, DIMS[li]), DIMS[li])

    # ---- layers 5..8: one packed [128, 512] bf16 slab, one wait --------------
    cps[5].wait()
    for j in range(4):                            # layers 5, 6, 7, 8
        li = 5 + j
        w = w58_v[:, j * LANE:(j + 1) * LANE]     # [128, 128] (W8 zero-padded in cols)
        z = jnp.dot(h.astype(jnp.bfloat16), w, preferred_element_type=jnp.float32)
        h = _relu_ln(z + bias(li - 1, LANE), DIMS[li])

    # ---- layers 9, 10: f32 tail, zero-padded to [128, 128] (lane-dense) ------
    z = jnp.dot(h, wt_ref[0], preferred_element_type=jnp.float32) + bias(8, LANE)
    h = _relu_ln(z, DIMS[9])
    z = jnp.dot(h, wt_ref[1], preferred_element_type=jnp.float32) + bias(9, LANE)
    h = _relu_ln(z, DIMS[10])

    # ---- layer 11: plain affine against the zero-padded [128,128] W11 slab.
    # ---- Lanes 6..127 of l11 are exactly zero; store is a full-width vst. ----
    l11 = jnp.dot(h, wt_ref[2], preferred_element_type=jnp.float32) + bias(10, LANE)
    l11_ref[...] = l11

    # ---- pred = sum_{k=0..4} l11[k] * data^(k+1) + l11[5].
    # ---- Tree-sum over precomputed powers: the 6 coefficient broadcasts are
    # ---- independent (no Horner dependency chain on the serial tail). --------
    c = [l11[:, k:k + 1] for k in range(NUM_COEFF)]
    pred_ref[...] = ((c[0] * d1 + c[1] * d2) + (c[2] * d3 + c[3] * d4)
                     + (c[4] * d5 + c[5]))


def prepare_params(weights, biases):
    """One-time parameter packing / casting (call at parameter-load time,
    NOT on every forward call): bf16 casts of the big weights, bias pack,
    W5..W8 slab, zero-padded tail weights."""
    f32 = jnp.float32

    b_pack = jnp.zeros((N_LAYERS, B_PAD), f32)
    for i, b in enumerate(biases):
        b_pack = b_pack.at[i, :b.shape[0]].set(b.astype(f32))

    # tail weights W9, W10, W11 zero-padded to [128, 128] each (f32, tiny)
    wt_pack = jnp.zeros((3, LANE, LANE), f32)
    for j, w in enumerate(weights[8:]):
        wt_pack = wt_pack.at[j, :w.shape[0], :w.shape[1]].set(w.astype(f32))

    # big weights in bf16 (halves streamed bytes; f32 accumulation in-kernel)
    w1 = weights[0].astype(jnp.bfloat16)
    w2 = weights[1].astype(jnp.bfloat16)
    w3 = weights[2].astype(jnp.bfloat16)
    w4 = weights[3].astype(jnp.bfloat16)

    # W5..W8 packed into one [128, 512] bf16 slab (W8 zero-padded to 128 cols)
    w58 = jnp.zeros((DIMS[4], 4 * LANE), jnp.bfloat16)
    for j, w in enumerate(weights[4:8]):
        w58 = w58.at[:, j * LANE:j * LANE + w.shape[1]].set(w.astype(jnp.bfloat16))

    return dict(b_pack=b_pack, wt_pack=wt_pack, w1=w1, w2=w2, w3=w3, w4=w4, w58=w58)


def encoder_x(x, data, params):
    """x: [DIMS[0]], data: [N], params from prepare_params().

    Returns (layer_11 [NUM_COEFF], pred [N]) in f32, matching EncoderX.forward.
    """
    f32 = jnp.float32
    x2 = x.reshape(1, -1).astype(f32)

    # sublane-dense data layout: pad N to a multiple of 128, view as [rows, 128]
    n = data.shape[0]
    rows = pl.cdiv(n, LANE)
    n_pad = rows * LANE
    d_tile = jnp.zeros((n_pad,), f32).at[:n].set(data.astype(f32)).reshape(rows, LANE)

    vmem = pltpu.MemorySpace.VMEM
    in_specs = ([pl.BlockSpec(memory_space=vmem)] * 4
                + [pl.BlockSpec(memory_space=pl.ANY)] * 5)
    out_specs = (pl.BlockSpec(memory_space=vmem),
                 pl.BlockSpec(memory_space=vmem))
    out_shape = (jax.ShapeDtypeStruct((1, LANE), f32),       # padded layer_11
                 jax.ShapeDtypeStruct((rows, LANE), f32))    # padded pred tile
    scratch_shapes = [
        pltpu.VMEM(params["w1"].shape, jnp.bfloat16),
        pltpu.VMEM(params["w2"].shape, jnp.bfloat16),
        pltpu.VMEM(params["w3"].shape, jnp.bfloat16),
        pltpu.VMEM(params["w4"].shape, jnp.bfloat16),
        pltpu.VMEM(params["w58"].shape, jnp.bfloat16),
        pltpu.SemaphoreType.DMA((N_DMA,)),
    ]

    flops = 2 * sum(DIMS[i] * DIMS[i + 1] for i in range(N_LAYERS)) + 11 * n_pad
    streamed = [params["w1"], params["w2"], params["w3"], params["w4"], params["w58"],
                params["wt_pack"], params["b_pack"], x2, d_tile]
    bytes_accessed = sum(int(a.size) * a.dtype.itemsize for a in streamed)
    bytes_accessed += (1 * LANE + rows * LANE) * 4           # outputs
    cost = pl.CostEstimate(flops=int(flops), transcendentals=0,
                           bytes_accessed=int(bytes_accessed))

    l11_pad, pred_tile = pl.pallas_call(
        encoder_kernel,
        out_shape=out_shape,
        in_specs=in_specs,
        out_specs=out_specs,
        scratch_shapes=scratch_shapes,
        cost_estimate=cost,
    )(x2, d_tile, params["b_pack"], params["wt_pack"],
      params["w1"], params["w2"], params["w3"], params["w4"], params["w58"])

    return l11_pad[0, :NUM_COEFF], pred_tile.reshape(-1)[:n]


if __name__ == "__main__":
    key = jax.random.PRNGKey(0)
    keys = jax.random.split(key, 2 * N_LAYERS + 1)

    # torch.rand-style U[0,1) init for all parameters (deterministic, synthetic).
    weights = [jax.random.uniform(keys[i], (DIMS[i], DIMS[i + 1]), jnp.float32)
               for i in range(N_LAYERS)]
    biases = [jax.random.uniform(keys[N_LAYERS + i], (DIMS[i + 1],), jnp.float32)
              for i in range(N_LAYERS)]
    x = jax.random.uniform(keys[2 * N_LAYERS], (DIMS[0],), jnp.float32)
    # TODO(synk): the original `data` global is undefined in the source file
    # (hard-coded length 5000); we synthesize a small deterministic grid here.
    data = jnp.linspace(-1.0, 1.0, DATA_N, dtype=jnp.float32)

    params = prepare_params(weights, biases)     # one-time packing / bf16 casts
    layer_11, pred = encoder_x(x, data, params)
    jax.block_until_ready((layer_11, pred))

    assert layer_11.shape == (NUM_COEFF,)
    assert pred.shape == (DATA_N,)
    assert bool(jnp.all(jnp.isfinite(layer_11))) and bool(jnp.all(jnp.isfinite(pred)))
    print("KERNEL_OK")
</pallas_src>

<mosaic_0001>
module attributes {stable_mosaic.version = 11 : i64} {
  func.func @encoder_kernel(%arg0: memref<1x512xf32, #tpu.memory_space<vmem>>, %arg1: memref<4x128xf32, #tpu.memory_space<vmem>>, %arg2: memref<11x384xf32, #tpu.memory_space<vmem>>, %arg3: memref<3x128x128xf32, #tpu.memory_space<vmem>>, %arg4: memref<512x384xbf16, #tpu.memory_space<any>>, %arg5: memref<384x256xbf16, #tpu.memory_space<any>>, %arg6: memref<256x256xbf16, #tpu.memory_space<any>>, %arg7: memref<256x128xbf16, #tpu.memory_space<any>>, %arg8: memref<128x512xbf16, #tpu.memory_space<any>>, %arg9: memref<1x128xf32, #tpu.memory_space<vmem>>, %arg10: memref<4x128xf32, #tpu.memory_space<vmem>>, %arg11: memref<512x384xbf16, #tpu.memory_space<vmem>>, %arg12: memref<384x256xbf16, #tpu.memory_space<vmem>>, %arg13: memref<256x256xbf16, #tpu.memory_space<vmem>>, %arg14: memref<256x128xbf16, #tpu.memory_space<vmem>>, %arg15: memref<128x512xbf16, #tpu.memory_space<vmem>>, %arg16: memref<6x!tpu.dma_semaphore, #tpu.memory_space<semaphore_mem>>) attributes {dimension_semantics = [], scalar_prefetch = 0 : i64, scratch_operands = 6 : i64, tpu.core_type = #tpu.core_type<tc>} {
    %c0_i32 = arith.constant 0 : i32
    %c0_i32_0 = arith.constant 0 : i32
    %c0_i32_1 = arith.constant 0 : i32
    %0 = tpu.memref_slice %arg4[%c0_i32_0, %c0_i32_1] : memref<512x384xbf16, #tpu.memory_space<any>> -> memref<256x384xbf16, #tpu.memory_space<any>>
    %c0_i32_2 = arith.constant 0 : i32
    %c0_i32_3 = arith.constant 0 : i32
    %1 = tpu.memref_slice %arg11[%c0_i32_2, %c0_i32_3] : memref<512x384xbf16, #tpu.memory_space<vmem>> -> memref<256x384xbf16, #tpu.memory_space<vmem>>
    %2 = tpu.memref_slice %arg16[%c0_i32] : memref<6x!tpu.dma_semaphore, #tpu.memory_space<semaphore_mem>> -> memref<1x!tpu.dma_semaphore, #tpu.memory_space<semaphore_mem>>
    %3 = tpu.memref_squeeze %2 : memref<1x!tpu.dma_semaphore, #tpu.memory_space<semaphore_mem>> -> memref<!tpu.dma_semaphore, #tpu.memory_space<semaphore_mem>>
    tpu.enqueue_dma source(%0 : memref<256x384xbf16, #tpu.memory_space<any>>) target(%1 : memref<256x384xbf16, #tpu.memory_space<vmem>>) target_semaphore(%3 : memref<!tpu.dma_semaphore, #tpu.memory_space<semaphore_mem>>)
    %c1_i32 = arith.constant 1 : i32
    %c256_i32 = arith.constant 256 : i32
    %c0_i32_4 = arith.constant 0 : i32
    %4 = tpu.memref_slice %arg4[%c256_i32, %c0_i32_4] : memref<512x384xbf16, #tpu.memory_space<any>> -> memref<256x384xbf16, #tpu.memory_space<any>>
    %c256_i32_5 = arith.constant 256 : i32
    %c0_i32_6 = arith.constant 0 : i32
    %5 = tpu.memref_slice %arg11[%c256_i32_5, %c0_i32_6] : memref<512x384xbf16, #tpu.memory_space<vmem>> -> memref<256x384xbf16, #tpu.memory_space<vmem>>
    %6 = tpu.memref_slice %arg16[%c1_i32] : memref<6x!tpu.dma_semaphore, #tpu.memory_space<semaphore_mem>> -> memref<1x!tpu.dma_semaphore, #tpu.memory_space<semaphore_mem>>
    %7 = tpu.memref_squeeze %6 : memref<1x!tpu.dma_semaphore, #tpu.memory_space<semaphore_mem>> -> memref<!tpu.dma_semaphore, #tpu.memory_space<semaphore_mem>>
    tpu.enqueue_dma source(%4 : memref<256x384xbf16, #tpu.memory_space<any>>) target(%5 : memref<256x384xbf16, #tpu.memory_space<vmem>>) target_semaphore(%7 : memref<!tpu.dma_semaphore, #tpu.memory_space<semaphore_mem>>)
    %c2_i32 = arith.constant 2 : i32
    %8 = tpu.memref_slice %arg16[%c2_i32] : memref<6x!tpu.dma_semaphore, #tpu.memory_space<semaphore_mem>> -> memref<1x!tpu.dma_semaphore, #tpu.memory_space<semaphore_mem>>
    %9 = tpu.memref_squeeze %8 : memref<1x!tpu.dma_semaphore, #tpu.memory_space<semaphore_mem>> -> memref<!tpu.dma_semaphore, #tpu.memory_space<semaphore_mem>>
    tpu.enqueue_dma source(%arg5 : memref<384x256xbf16, #tpu.memory_space<any>>) target(%arg12 : memref<384x256xbf16, #tpu.memory_space<vmem>>) target_semaphore(%9 : memref<!tpu.dma_semaphore, #tpu.memory_space<semaphore_mem>>)
    %c3_i32 = arith.constant 3 : i32
    %10 = tpu.memref_slice %arg16[%c3_i32] : memref<6x!tpu.dma_semaphore, #tpu.memory_space<semaphore_mem>> -> memref<1x!tpu.dma_semaphore, #tpu.memory_space<semaphore_mem>>
    %11 = tpu.memref_squeeze %10 : memref<1x!tpu.dma_semaphore, #tpu.memory_space<semaphore_mem>> -> memref<!tpu.dma_semaphore, #tpu.memory_space<semaphore_mem>>
    tpu.enqueue_dma source(%arg6 : memref<256x256xbf16, #tpu.memory_space<any>>) target(%arg13 : memref<256x256xbf16, #tpu.memory_space<vmem>>) target_semaphore(%11 : memref<!tpu.dma_semaphore, #tpu.memory_space<semaphore_mem>>)
    %c4_i32 = arith.constant 4 : i32
    %12 = tpu.memref_slice %arg16[%c4_i32] : memref<6x!tpu.dma_semaphore, #tpu.memory_space<semaphore_mem>> -> memref<1x!tpu.dma_semaphore, #tpu.memory_space<semaphore_mem>>
    %13 = tpu.memref_squeeze %12 : memref<1x!tpu.dma_semaphore, #tpu.memory_space<semaphore_mem>> -> memref<!tpu.dma_semaphore, #tpu.memory_space<semaphore_mem>>
    tpu.enqueue_dma source(%arg7 : memref<256x128xbf16, #tpu.memory_space<any>>) target(%arg14 : memref<256x128xbf16, #tpu.memory_space<vmem>>) target_semaphore(%13 : memref<!tpu.dma_semaphore, #tpu.memory_space<semaphore_mem>>)
    %c5_i32 = arith.constant 5 : i32
    %14 = tpu.memref_slice %arg16[%c5_i32] : memref<6x!tpu.dma_semaphore, #tpu.memory_space<semaphore_mem>> -> memref<1x!tpu.dma_semaphore, #tpu.memory_space<semaphore_mem>>
    %15 = tpu.memref_squeeze %14 : memref<1x!tpu.dma_semaphore, #tpu.memory_space<semaphore_mem>> -> memref<!tpu.dma_semaphore, #tpu.memory_space<semaphore_mem>>
    tpu.enqueue_dma source(%arg8 : memref<128x512xbf16, #tpu.memory_space<any>>) target(%arg15 : memref<128x512xbf16, #tpu.memory_space<vmem>>) target_semaphore(%15 : memref<!tpu.dma_semaphore, #tpu.memory_space<semaphore_mem>>)
    %c0 = arith.constant 0 : index
    %c0_7 = arith.constant 0 : index
    %16 = vector.load %arg1[%c0, %c0_7] : memref<4x128xf32, #tpu.memory_space<vmem>>, vector<4x128xf32>
    %17 = arith.mulf %16, %16 : vector<4x128xf32>
    %18 = arith.mulf %17, %16 : vector<4x128xf32>
    %19 = arith.mulf %17, %17 : vector<4x128xf32>
    %20 = arith.mulf %19, %16 : vector<4x128xf32>
    %c0_8 = arith.constant 0 : index
    %c0_9 = arith.constant 0 : index
    %21 = vector.load %arg0[%c0_8, %c0_9] : memref<1x512xf32, #tpu.memory_space<vmem>>, vector<1x512xf32>
    %22 = arith.truncf %21 : vector<1x512xf32> to vector<1x512xbf16>
    %c0_i32_10 = arith.constant 0 : i32
    %c0_i32_11 = arith.constant 0 : i32
    %c0_i32_12 = arith.constant 0 : i32
    %23 = tpu.memref_slice %arg4[%c0_i32_11, %c0_i32_12] : memref<512x384xbf16, #tpu.memory_space<any>> -> memref<256x384xbf16, #tpu.memory_space<any>>
    %c0_i32_13 = arith.constant 0 : i32
    %c0_i32_14 = arith.constant 0 : i32
    %24 = tpu.memref_slice %arg11[%c0_i32_13, %c0_i32_14] : memref<512x384xbf16, #tpu.memory_space<vmem>> -> memref<256x384xbf16, #tpu.memory_space<vmem>>
    %25 = tpu.memref_slice %arg16[%c0_i32_10] : memref<6x!tpu.dma_semaphore, #tpu.memory_space<semaphore_mem>> -> memref<1x!tpu.dma_semaphore, #tpu.memory_space<semaphore_mem>>
    %26 = tpu.memref_squeeze %25 : memref<1x!tpu.dma_semaphore, #tpu.memory_space<semaphore_mem>> -> memref<!tpu.dma_semaphore, #tpu.memory_space<semaphore_mem>>
    tpu.wait_dma2 semaphore(%26 : memref<!tpu.dma_semaphore, #tpu.memory_space<semaphore_mem>>) src(%23 : memref<256x384xbf16, #tpu.memory_space<any>>) dst(%24 : memref<256x384xbf16, #tpu.memory_space<vmem>>)
    %27 = vector.extract_strided_slice %22 {offsets = [0, 0], sizes = [1, 256], strides = [1, 1]} : vector<1x512xbf16> to vector<1x256xbf16>
    %c0_15 = arith.constant 0 : index
    %c0_16 = arith.constant 0 : index
    %28 = vector.load %arg11[%c0_15, %c0_16] : memref<512x384xbf16, #tpu.memory_space<vmem>>, vector<256x384xbf16>
    %cst = arith.constant dense<0.000000e+00> : vector<1x384xf32>
    %29 = tpu.matmul %27, %28, %cst {dimension_numbers = #tpu.dot_dimension_numbers<[1], [0], [0], [1], [0, 0, 1, 1], [], []>} : vector<1x256xbf16>, vector<256x384xbf16>, vector<1x384xf32> -> vector<1x384xf32>
    %c1_i32_17 = arith.constant 1 : i32
    %c256_i32_18 = arith.constant 256 : i32
    %c0_i32_19 = arith.constant 0 : i32
    %30 = tpu.memref_slice %arg4[%c256_i32_18, %c0_i32_19] : memref<512x384xbf16, #tpu.memory_space<any>> -> memref<256x384xbf16, #tpu.memory_space<any>>
    %c256_i32_20 = arith.constant 256 : i32
    %c0_i32_21 = arith.constant 0 : i32
    %31 = tpu.memref_slice %arg11[%c256_i32_20, %c0_i32_21] : memref<512x384xbf16, #tpu.memory_space<vmem>> -> memref<256x384xbf16, #tpu.memory_space<vmem>>
    %32 = tpu.memref_slice %arg16[%c1_i32_17] : memref<6x!tpu.dma_semaphore, #tpu.memory_space<semaphore_mem>> -> memref<1x!tpu.dma_semaphore, #tpu.memory_space<semaphore_mem>>
    %33 = tpu.memref_squeeze %32 : memref<1x!tpu.dma_semaphore, #tpu.memory_space<semaphore_mem>> -> memref<!tpu.dma_semaphore, #tpu.memory_space<semaphore_mem>>
    tpu.wait_dma2 semaphore(%33 : memref<!tpu.dma_semaphore, #tpu.memory_space<semaphore_mem>>) src(%30 : memref<256x384xbf16, #tpu.memory_space<any>>) dst(%31 : memref<256x384xbf16, #tpu.memory_space<vmem>>)
    %34 = vector.extract_strided_slice %22 {offsets = [0, 256], sizes = [1, 256], strides = [1, 1]} : vector<1x512xbf16> to vector<1x256xbf16>
    %c256 = arith.constant 256 : index
    %c0_22 = arith.constant 0 : index
    %35 = vector.load %arg11[%c256, %c0_22] : memref<512x384xbf16, #tpu.memory_space<vmem>>, vector<256x384xbf16>
    %cst_23 = arith.constant dense<0.000000e+00> : vector<1x384xf32>
    %36 = tpu.matmul %34, %35, %cst_23 {dimension_numbers = #tpu.dot_dimension_numbers<[1], [0], [0], [1], [0, 0, 1, 1], [], []>} : vector<1x256xbf16>, vector<256x384xbf16>, vector<1x384xf32> -> vector<1x384xf32>
    %37 = arith.addf %29, %36 : vector<1x384xf32>
    %c0_24 = arith.constant 0 : index
    %c0_25 = arith.constant 0 : index
    %38 = vector.load %arg2[%c0_24, %c0_25] : memref<11x384xf32, #tpu.memory_space<vmem>>, vector<1x384xf32>
    %39 = arith.addf %37, %38 : vector<1x384xf32>
    %cst_26 = arith.constant 0.000000e+00 : f32
    %40 = vector.broadcast %cst_26 : f32 to vector<1x384xf32>
    %41 = arith.maximumf %39, %40 : vector<1x384xf32>
    %cst_27 = arith.constant dense<0.000000e+00> : vector<1xf32>
    %42 = vector.multi_reduction <add>, %41, %cst_27 [1] : vector<1x384xf32> to vector<1xf32>
    %43 = vector.shape_cast %42 : vector<1xf32> to vector<1x1xf32>
    %cst_28 = arith.constant 0.00260416674 : f32
    %44 = vector.broadcast %cst_28 : f32 to vector<1x1xf32>
    %45 = arith.mulf %43, %44 : vector<1x1xf32>
    %46 = arith.mulf %41, %41 : vector<1x384xf32>
    %cst_29 = arith.constant dense<0.000000e+00> : vector<1xf32>
    %47 = vector.multi_reduction <add>, %46, %cst_29 [1] : vector<1x384xf32> to vector<1xf32>
    %48 = vector.shape_cast %47 : vector<1xf32> to vector<1x1xf32>
    %cst_30 = arith.constant 0.00260416674 : f32
    %49 = vector.broadcast %cst_30 : f32 to vector<1x1xf32>
    %50 = arith.mulf %48, %49 : vector<1x1xf32>
    %51 = arith.mulf %45, %45 : vector<1x1xf32>
    %52 = arith.subf %50, %51 : vector<1x1xf32>
    %cst_31 = arith.constant 0.000000e+00 : f32
    %53 = vector.broadcast %cst_31 : f32 to vector<1x1xf32>
    %54 = arith.maximumf %52, %53 : vector<1x1xf32>
    %55 = vector.broadcast %45 : vector<1x1xf32> to vector<1x384xf32>
    %56 = arith.subf %41, %55 : vector<1x384xf32>
    %cst_32 = arith.constant 9.99999974E-6 : f32
    %57 = vector.broadcast %cst_32 : f32 to vector<1x1xf32>
    %58 = arith.addf %54, %57 : vector<1x1xf32>
    %59 = math.rsqrt %58 : vector<1x1xf32>
    %60 = vector.broadcast %59 : vector<1x1xf32> to vector<1x384xf32>
    %61 = arith.mulf %56, %60 : vector<1x384xf32>
    %c2_i32_33 = arith.constant 2 : i32
    %62 = tpu.memref_slice %arg16[%c2_i32_33] : memref<6x!tpu.dma_semaphore, #tpu.memory_space<semaphore_mem>> -> memref<1x!tpu.dma_semaphore, #tpu.memory_space<semaphore_mem>>
    %63 = tpu.memref_squeeze %62 : memref<1x!tpu.dma_semaphore, #tpu.memory_space<semaphore_mem>> -> memref<!tpu.dma_semaphore, #tpu.memory_space<semaphore_mem>>
    tpu.wait_dma2 semaphore(%63 : memref<!tpu.dma_semaphore, #tpu.memory_space<semaphore_mem>>) src(%arg5 : memref<384x256xbf16, #tpu.memory_space<any>>) dst(%arg12 : memref<384x256xbf16, #tpu.memory_space<vmem>>)
    %64 = arith.truncf %61 : vector<1x384xf32> to vector<1x384xbf16>
    %c0_34 = arith.constant 0 : index
    %c0_35 = arith.constant 0 : index
    %65 = vector.load %arg12[%c0_34, %c0_35] : memref<384x256xbf16, #tpu.memory_space<vmem>>, vector<384x256xbf16>
    %cst_36 = arith.constant dense<0.000000e+00> : vector<1x256xf32>
    %66 = tpu.matmul %64, %65, %cst_36 {dimension_numbers = #tpu.dot_dimension_numbers<[1], [0], [0], [1], [0, 0, 1, 1], [], []>} : vector<1x384xbf16>, vector<384x256xbf16>, vector<1x256xf32> -> vector<1x256xf32>
    %c1 = arith.constant 1 : index
    %c0_37 = arith.constant 0 : index
    %67 = vector.load %arg2[%c1, %c0_37] : memref<11x384xf32, #tpu.memory_space<vmem>>, vector<1x256xf32>
    %68 = arith.addf %66, %67 : vector<1x256xf32>
    %cst_38 = arith.constant 0.000000e+00 : f32
    %69 = vector.broadcast %cst_38 : f32 to vector<1x256xf32>
    %70 = arith.maximumf %68, %69 : vector<1x256xf32>
    %cst_39 = arith.constant dense<0.000000e+00> : vector<1xf32>
    %71 = vector.multi_reduction <add>, %70, %cst_39 [1] : vector<1x256xf32> to vector<1xf32>
    %72 = vector.shape_cast %71 : vector<1xf32> to vector<1x1xf32>
    %cst_40 = arith.constant 3.906250e-03 : f32
    %73 = vector.broadcast %cst_40 : f32 to vector<1x1xf32>
    %74 = arith.mulf %72, %73 : vector<1x1xf32>
    %75 = arith.mulf %70, %70 : vector<1x256xf32>
    %cst_41 = arith.constant dense<0.000000e+00> : vector<1xf32>
    %76 = vector.multi_reduction <add>, %75, %cst_41 [1] : vector<1x256xf32> to vector<1xf32>
    %77 = vector.shape_cast %76 : vector<1xf32> to vector<1x1xf32>
    %cst_42 = arith.constant 3.906250e-03 : f32
    %78 = vector.broadcast %cst_42 : f32 to vector<1x1xf32>
    %79 = arith.mulf %77, %78 : vector<1x1xf32>
    %80 = arith.mulf %74, %74 : vector<1x1xf32>
    %81 = arith.subf %79, %80 : vector<1x1xf32>
    %cst_43 = arith.constant 0.000000e+00 : f32
    %82 = vector.broadcast %cst_43 : f32 to vector<1x1xf32>
    %83 = arith.maximumf %81, %82 : vector<1x1xf32>
    %84 = vector.broadcast %74 : vector<1x1xf32> to vector<1x256xf32>
    %85 = arith.subf %70, %84 : vector<1x256xf32>
    %cst_44 = arith.constant 9.99999974E-6 : f32
    %86 = vector.broadcast %cst_44 : f32 to vector<1x1xf32>
    %87 = arith.addf %83, %86 : vector<1x1xf32>
    %88 = math.rsqrt %87 : vector<1x1xf32>
    %89 = vector.broadcast %88 : vector<1x1xf32> to vector<1x256xf32>
    %90 = arith.mulf %85, %89 : vector<1x256xf32>
    %c3_i32_45 = arith.constant 3 : i32
    %91 = tpu.memref_slice %arg16[%c3_i32_45] : memref<6x!tpu.dma_semaphore, #tpu.memory_space<semaphore_mem>> -> memref<1x!tpu.dma_semaphore, #tpu.memory_space<semaphore_mem>>
    %92 = tpu.memref_squeeze %91 : memref<1x!tpu.dma_semaphore, #tpu.memory_space<semaphore_mem>> -> memref<!tpu.dma_semaphore, #tpu.memory_space<semaphore_mem>>
    tpu.wait_dma2 semaphore(%92 : memref<!tpu.dma_semaphore, #tpu.memory_space<semaphore_mem>>) src(%arg6 : memref<256x256xbf16, #tpu.memory_space<any>>) dst(%arg13 : memref<256x256xbf16, #tpu.memory_space<vmem>>)
    %93 = arith.truncf %90 : vector<1x256xf32> to vector<1x256xbf16>
    %c0_46 = arith.constant 0 : index
    %c0_47 = arith.constant 0 : index
    %94 = vector.load %arg13[%c0_46, %c0_47] : memref<256x256xbf16, #tpu.memory_space<vmem>>, vector<256x256xbf16>
    %cst_48 = arith.constant dense<0.000000e+00> : vector<1x256xf32>
    %95 = tpu.matmul %93, %94, %cst_48 {dimension_numbers = #tpu.dot_dimension_numbers<[1], [0], [0], [1], [0, 0, 1, 1], [], []>} : vector<1x256xbf16>, vector<256x256xbf16>, vector<1x256xf32> -> vector<1x256xf32>
    %c2 = arith.constant 2 : index
    %c0_49 = arith.constant 0 : index
    %96 = vector.load %arg2[%c2, %c0_49] : memref<11x384xf32, #tpu.memory_space<vmem>>, vector<1x256xf32>
    %97 = arith.addf %95, %96 : vector<1x256xf32>
    %cst_50 = arith.constant 0.000000e+00 : f32
    %98 = vector.broadcast %cst_50 : f32 to vector<1x256xf32>
    %99 = arith.maximumf %97, %98 : vector<1x256xf32>
    %cst_51 = arith.constant dense<0.000000e+00> : vector<1xf32>
    %100 = vector.multi_reduction <add>, %99, %cst_51 [1] : vector<1x256xf32> to vector<1xf32>
    %101 = vector.shape_cast %100 : vector<1xf32> to vector<1x1xf32>
    %cst_52 = arith.constant 3.906250e-03 : f32
    %102 = vector.broadcast %cst_52 : f32 to vector<1x1xf32>
    %103 = arith.mulf %101, %102 : vector<1x1xf32>
    %104 = arith.mulf %99, %99 : vector<1x256xf32>
    %cst_53 = arith.constant dense<0.000000e+00> : vector<1xf32>
    %105 = vector.multi_reduction <add>, %104, %cst_53 [1] : vector<1x256xf32> to vector<1xf32>
    %106 = vector.shape_cast %105 : vector<1xf32> to vector<1x1xf32>
    %cst_54 = arith.constant 3.906250e-03 : f32
    %107 = vector.broadcast %cst_54 : f32 to vector<1x1xf32>
    %108 = arith.mulf %106, %107 : vector<1x1xf32>
    %109 = arith.mulf %103, %103 : vector<1x1xf32>
    %110 = arith.subf %108, %109 : vector<1x1xf32>
    %cst_55 = arith.constant 0.000000e+00 : f32
    %111 = vector.broadcast %cst_55 : f32 to vector<1x1xf32>
    %112 = arith.maximumf %110, %111 : vector<1x1xf32>
    %113 = vector.broadcast %103 : vector<1x1xf32> to vector<1x256xf32>
    %114 = arith.subf %99, %113 : vector<1x256xf32>
    %cst_56 = arith.constant 9.99999974E-6 : f32
    %115 = vector.broadcast %cst_56 : f32 to vector<1x1xf32>
    %116 = arith.addf %112, %115 : vector<1x1xf32>
    %117 = math.rsqrt %116 : vector<1x1xf32>
    %118 = vector.broadcast %117 : vector<1x1xf32> to vector<1x256xf32>
    %119 = arith.mulf %114, %118 : vector<1x256xf32>
    %c4_i32_57 = arith.constant 4 : i32
    %120 = tpu.memref_slice %arg16[%c4_i32_57] : memref<6x!tpu.dma_semaphore, #tpu.memory_space<semaphore_mem>> -> memref<1x!tpu.dma_semaphore, #tpu.memory_space<semaphore_mem>>
    %121 = tpu.memref_squeeze %120 : memref<1x!tpu.dma_semaphore, #tpu.memory_space<semaphore_mem>> -> memref<!tpu.dma_semaphore, #tpu.memory_space<semaphore_mem>>
    tpu.wait_dma2 semaphore(%121 : memref<!tpu.dma_semaphore, #tpu.memory_space<semaphore_mem>>) src(%arg7 : memref<256x128xbf16, #tpu.memory_space<any>>) dst(%arg14 : memref<256x128xbf16, #tpu.memory_space<vmem>>)
    %122 = arith.truncf %119 : vector<1x256xf32> to vector<1x256xbf16>
    %c0_58 = arith.constant 0 : index
    %c0_59 = arith.constant 0 : index
    %123 = vector.load %arg14[%c0_58, %c0_59] : memref<256x128xbf16, #tpu.memory_space<vmem>>, vector<256x128xbf16>
    %cst_60 = arith.constant dense<0.000000e+00> : vector<1x128xf32>
    %124 = tpu.matmul %122, %123, %cst_60 {dimension_numbers = #tpu.dot_dimension_numbers<[1], [0], [0], [1], [0, 0, 1, 1], [], []>} : vector<1x256xbf16>, vector<256x128xbf16>, vector<1x128xf32> -> vector<1x128xf32>
    %c3 = arith.constant 3 : index
    %c0_61 = arith.constant 0 : index
    %125 = vector.load %arg2[%c3, %c0_61] : memref<11x384xf32, #tpu.memory_space<vmem>>, vector<1x128xf32>
    %126 = arith.addf %124, %125 : vector<1x128xf32>
    %cst_62 = arith.constant 0.000000e+00 : f32
    %127 = vector.broadcast %cst_62 : f32 to vector<1x128xf32>
    %128 = arith.maximumf %126, %127 : vector<1x128xf32>
    %cst_63 = arith.constant dense<0.000000e+00> : vector<1xf32>
    %129 = vector.multi_reduction <add>, %128, %cst_63 [1] : vector<1x128xf32> to vector<1xf32>
    %130 = vector.shape_cast %129 : vector<1xf32> to vector<1x1xf32>
    %cst_64 = arith.constant 7.812500e-03 : f32
    %131 = vector.broadcast %cst_64 : f32 to vector<1x1xf32>
    %132 = arith.mulf %130, %131 : vector<1x1xf32>
    %133 = arith.mulf %128, %128 : vector<1x128xf32>
    %cst_65 = arith.constant dense<0.000000e+00> : vector<1xf32>
    %134 = vector.multi_reduction <add>, %133, %cst_65 [1] : vector<1x128xf32> to vector<1xf32>
    %135 = vector.shape_cast %134 : vector<1xf32> to vector<1x1xf32>
    %cst_66 = arith.constant 7.812500e-03 : f32
    %136 = vector.broadcast %cst_66 : f32 to vector<1x1xf32>
    %137 = arith.mulf %135, %136 : vector<1x1xf32>
    %138 = arith.mulf %132, %132 : vector<1x1xf32>
    %139 = arith.subf %137, %138 : vector<1x1xf32>
    %cst_67 = arith.constant 0.000000e+00 : f32
    %140 = vector.broadcast %cst_67 : f32 to vector<1x1xf32>
    %141 = arith.maximumf %139, %140 : vector<1x1xf32>
    %142 = vector.broadcast %132 : vector<1x1xf32> to vector<1x128xf32>
    %143 = arith.subf %128, %142 : vector<1x128xf32>
    %cst_68 = arith.constant 9.99999974E-6 : f32
    %144 = vector.broadcast %cst_68 : f32 to vector<1x1xf32>
    %145 = arith.addf %141, %144 : vector<1x1xf32>
    %146 = math.rsqrt %145 : vector<1x1xf32>
    %147 = vector.broadcast %146 : vector<1x1xf32> to vector<1x128xf32>
    %148 = arith.mulf %143, %147 : vector<1x128xf32>
    %c5_i32_69 = arith.constant 5 : i32
    %149 = tpu.memref_slice %arg16[%c5_i32_69] : memref<6x!tpu.dma_semaphore, #tpu.memory_space<semaphore_mem>> -> memref<1x!tpu.dma_semaphore, #tpu.memory_space<semaphore_mem>>
    %150 = tpu.memref_squeeze %149 : memref<1x!tpu.dma_semaphore, #tpu.memory_space<semaphore_mem>> -> memref<!tpu.dma_semaphore, #tpu.memory_space<semaphore_mem>>
    tpu.wait_dma2 semaphore(%150 : memref<!tpu.dma_semaphore, #tpu.memory_space<semaphore_mem>>) src(%arg8 : memref<128x512xbf16, #tpu.memory_space<any>>) dst(%arg15 : memref<128x512xbf16, #tpu.memory_space<vmem>>)
    %c0_70 = arith.constant 0 : index
    %c0_71 = arith.constant 0 : index
    %151 = vector.load %arg15[%c0_70, %c0_71] : memref<128x512xbf16, #tpu.memory_space<vmem>>, vector<128x128xbf16>
    %152 = arith.truncf %148 : vector<1x128xf32> to vector<1x128xbf16>
    %cst_72 = arith.constant dense<0.000000e+00> : vector<1x128xf32>
    %153 = tpu.matmul %152, %151, %cst_72 {dimension_numbers = #tpu.dot_dimension_numbers<[1], [0], [0], [1], [0, 0, 1, 1], [], []>} : vector<1x128xbf16>, vector<128x128xbf16>, vector<1x128xf32> -> vector<1x128xf32>
    %c4 = arith.constant 4 : index
    %c0_73 = arith.constant 0 : index
    %154 = vector.load %arg2[%c4, %c0_73] : memref<11x384xf32, #tpu.memory_space<vmem>>, vector<1x128xf32>
    %155 = arith.addf %153, %154 : vector<1x128xf32>
    %cst_74 = arith.constant 0.000000e+00 : f32
    %156 = vector.broadcast %cst_74 : f32 to vector<1x128xf32>
    %157 = arith.maximumf %155, %156 : vector<1x128xf32>
    %cst_75 = arith.constant dense<0.000000e+00> : vector<1xf32>
    %158 = vector.multi_reduction <add>, %157, %cst_75 [1] : vector<1x128xf32> to vector<1xf32>
    %159 = vector.shape_cast %158 : vector<1xf32> to vector<1x1xf32>
    %cst_76 = arith.constant 7.812500e-03 : f32
    %160 = vector.broadcast %cst_76 : f32 to vector<1x1xf32>
    %161 = arith.mulf %159, %160 : vector<1x1xf32>
    %162 = arith.mulf %157, %157 : vector<1x128xf32>
    %cst_77 = arith.constant dense<0.000000e+00> : vector<1xf32>
    %163 = vector.multi_reduction <add>, %162, %cst_77 [1] : vector<1x128xf32> to vector<1xf32>
    %164 = vector.shape_cast %163 : vector<1xf32> to vector<1x1xf32>
    %cst_78 = arith.constant 7.812500e-03 : f32
    %165 = vector.broadcast %cst_78 : f32 to vector<1x1xf32>
    %166 = arith.mulf %164, %165 : vector<1x1xf32>
    %167 = arith.mulf %161, %161 : vector<1x1xf32>
    %168 = arith.subf %166, %167 : vector<1x1xf32>
    %cst_79 = arith.constant 0.000000e+00 : f32
    %169 = vector.broadcast %cst_79 : f32 to vector<1x1xf32>
    %170 = arith.maximumf %168, %169 : vector<1x1xf32>
    %171 = vector.broadcast %161 : vector<1x1xf32> to vector<1x128xf32>
    %172 = arith.subf %157, %171 : vector<1x128xf32>
    %cst_80 = arith.constant 9.99999974E-6 : f32
    %173 = vector.broadcast %cst_80 : f32 to vector<1x1xf32>
    %174 = arith.addf %170, %173 : vector<1x1xf32>
    %175 = math.rsqrt %174 : vector<1x1xf32>
    %176 = vector.broadcast %175 : vector<1x1xf32> to vector<1x128xf32>
    %177 = arith.mulf %172, %176 : vector<1x128xf32>
    %c0_81 = arith.constant 0 : index
    %c128 = arith.constant 128 : index
    %178 = vector.load %arg15[%c0_81, %c128] : memref<128x512xbf16, #tpu.memory_space<vmem>>, vector<128x128xbf16>
    %179 = arith.truncf %177 : vector<1x128xf32> to vector<1x128xbf16>
    %cst_82 = arith.constant dense<0.000000e+00> : vector<1x128xf32>
    %180 = tpu.matmul %179, %178, %cst_82 {dimension_numbers = #tpu.dot_dimension_numbers<[1], [0], [0], [1], [0, 0, 1, 1], [], []>} : vector<1x128xbf16>, vector<128x128xbf16>, vector<1x128xf32> -> vector<1x128xf32>
    %c5 = arith.constant 5 : index
    %c0_83 = arith.constant 0 : index
    %181 = vector.load %arg2[%c5, %c0_83] : memref<11x384xf32, #tpu.memory_space<vmem>>, vector<1x128xf32>
    %182 = arith.addf %180, %181 : vector<1x128xf32>
    %cst_84 = arith.constant 0.000000e+00 : f32
    %183 = vector.broadcast %cst_84 : f32 to vector<1x128xf32>
    %184 = arith.maximumf %182, %183 : vector<1x128xf32>
    %cst_85 = arith.constant dense<0.000000e+00> : vector<1xf32>
    %185 = vector.multi_reduction <add>, %184, %cst_85 [1] : vector<1x128xf32> to vector<1xf32>
    %186 = vector.shape_cast %185 : vector<1xf32> to vector<1x1xf32>
    %cst_86 = arith.constant 7.812500e-03 : f32
    %187 = vector.broadcast %cst_86 : f32 to vector<1x1xf32>
    %188 = arith.mulf %186, %187 : vector<1x1xf32>
    %189 = arith.mulf %184, %184 : vector<1x128xf32>
    %cst_87 = arith.constant dense<0.000000e+00> : vector<1xf32>
    %190 = vector.multi_reduction <add>, %189, %cst_87 [1] : vector<1x128xf32> to vector<1xf32>
    %191 = vector.shape_cast %190 : vector<1xf32> to vector<1x1xf32>
    %cst_88 = arith.constant 7.812500e-03 : f32
    %192 = vector.broadcast %cst_88 : f32 to vector<1x1xf32>
    %193 = arith.mulf %191, %192 : vector<1x1xf32>
    %194 = arith.mulf %188, %188 : vector<1x1xf32>
    %195 = arith.subf %193, %194 : vector<1x1xf32>
    %cst_89 = arith.constant 0.000000e+00 : f32
    %196 = vector.broadcast %cst_89 : f32 to vector<1x1xf32>
    %197 = arith.maximumf %195, %196 : vector<1x1xf32>
    %198 = vector.broadcast %188 : vector<1x1xf32> to vector<1x128xf32>
    %199 = arith.subf %184, %198 : vector<1x128xf32>
    %cst_90 = arith.constant 9.99999974E-6 : f32
    %200 = vector.broadcast %cst_90 : f32 to vector<1x1xf32>
    %201 = arith.addf %197, %200 : vector<1x1xf32>
    %202 = math.rsqrt %201 : vector<1x1xf32>
    %203 = vector.broadcast %202 : vector<1x1xf32> to vector<1x128xf32>
    %204 = arith.mulf %199, %203 : vector<1x128xf32>
    %c0_91 = arith.constant 0 : index
    %c256_92 = arith.constant 256 : index
    %205 = vector.load %arg15[%c0_91, %c256_92] : memref<128x512xbf16, #tpu.memory_space<vmem>>, vector<128x128xbf16>
    %206 = arith.truncf %204 : vector<1x128xf32> to vector<1x128xbf16>
    %cst_93 = arith.constant dense<0.000000e+00> : vector<1x128xf32>
    %207 = tpu.matmul %206, %205, %cst_93 {dimension_numbers = #tpu.dot_dimension_numbers<[1], [0], [0], [1], [0, 0, 1, 1], [], []>} : vector<1x128xbf16>, vector<128x128xbf16>, vector<1x128xf32> -> vector<1x128xf32>
    %c6 = arith.constant 6 : index
    %c0_94 = arith.constant 0 : index
    %208 = vector.load %arg2[%c6, %c0_94] : memref<11x384xf32, #tpu.memory_space<vmem>>, vector<1x128xf32>
    %209 = arith.addf %207, %208 : vector<1x128xf32>
    %cst_95 = arith.constant 0.000000e+00 : f32
    %210 = vector.broadcast %cst_95 : f32 to vector<1x128xf32>
    %211 = arith.maximumf %209, %210 : vector<1x128xf32>
    %cst_96 = arith.constant dense<0.000000e+00> : vector<1xf32>
    %212 = vector.multi_reduction <add>, %211, %cst_96 [1] : vector<1x128xf32> to vector<1xf32>
    %213 = vector.shape_cast %212 : vector<1xf32> to vector<1x1xf32>
    %cst_97 = arith.constant 7.812500e-03 : f32
    %214 = vector.broadcast %cst_97 : f32 to vector<1x1xf32>
    %215 = arith.mulf %213, %214 : vector<1x1xf32>
    %216 = arith.mulf %211, %211 : vector<1x128xf32>
    %cst_98 = arith.constant dense<0.000000e+00> : vector<1xf32>
    %217 = vector.multi_reduction <add>, %216, %cst_98 [1] : vector<1x128xf32> to vector<1xf32>
    %218 = vector.shape_cast %217 : vector<1xf32> to vector<1x1xf32>
    %cst_99 = arith.constant 7.812500e-03 : f32
    %219 = vector.broadcast %cst_99 : f32 to vector<1x1xf32>
    %220 = arith.mulf %218, %219 : vector<1x1xf32>
    %221 = arith.mulf %215, %215 : vector<1x1xf32>
    %222 = arith.subf %220, %221 : vector<1x1xf32>
    %cst_100 = arith.constant 0.000000e+00 : f32
    %223 = vector.broadcast %cst_100 : f32 to vector<1x1xf32>
    %224 = arith.maximumf %222, %223 : vector<1x1xf32>
    %225 = vector.broadcast %215 : vector<1x1xf32> to vector<1x128xf32>
    %226 = arith.subf %211, %225 : vector<1x128xf32>
    %cst_101 = arith.constant 9.99999974E-6 : f32
    %227 = vector.broadcast %cst_101 : f32 to vector<1x1xf32>
    %228 = arith.addf %224, %227 : vector<1x1xf32>
    %229 = math.rsqrt %228 : vector<1x1xf32>
    %230 = vector.broadcast %229 : vector<1x1xf32> to vector<1x128xf32>
    %231 = arith.mulf %226, %230 : vector<1x128xf32>
    %c0_102 = arith.constant 0 : index
    %c384 = arith.constant 384 : index
    %232 = vector.load %arg15[%c0_102, %c384] : memref<128x512xbf16, #tpu.memory_space<vmem>>, vector<128x128xbf16>
    %233 = arith.truncf %231 : vector<1x128xf32> to vector<1x128xbf16>
    %cst_103 = arith.constant dense<0.000000e+00> : vector<1x128xf32>
    %234 = tpu.matmul %233, %232, %cst_103 {dimension_numbers = #tpu.dot_dimension_numbers<[1], [0], [0], [1], [0, 0, 1, 1], [], []>} : vector<1x128xbf16>, vector<128x128xbf16>, vector<1x128xf32> -> vector<1x128xf32>
    %c7 = arith.constant 7 : index
    %c0_104 = arith.constant 0 : index
    %235 = vector.load %arg2[%c7, %c0_104] : memref<11x384xf32, #tpu.memory_space<vmem>>, vector<1x128xf32>
    %236 = arith.addf %234, %235 : vector<1x128xf32>
    %cst_105 = arith.constant 0.000000e+00 : f32
    %237 = vector.broadcast %cst_105 : f32 to vector<1x128xf32>
    %238 = arith.maximumf %236, %237 : vector<1x128xf32>
    %cst_106 = arith.constant dense<0.000000e+00> : vector<1xf32>
    %239 = vector.multi_reduction <add>, %238, %cst_106 [1] : vector<1x128xf32> to vector<1xf32>
    %240 = vector.shape_cast %239 : vector<1xf32> to vector<1x1xf32>
    %cst_107 = arith.constant 1.562500e-02 : f32
    %241 = vector.broadcast %cst_107 : f32 to vector<1x1xf32>
    %242 = arith.mulf %240, %241 : vector<1x1xf32>
    %243 = arith.mulf %238, %238 : vector<1x128xf32>
    %cst_108 = arith.constant dense<0.000000e+00> : vector<1xf32>
    %244 = vector.multi_reduction <add>, %243, %cst_108 [1] : vector<1x128xf32> to vector<1xf32>
    %245 = vector.shape_cast %244 : vector<1xf32> to vector<1x1xf32>
    %cst_109 = arith.constant 1.562500e-02 : f32
    %246 = vector.broadcast %cst_109 : f32 to vector<1x1xf32>
    %247 = arith.mulf %245, %246 : vector<1x1xf32>
    %248 = arith.mulf %242, %242 : vector<1x1xf32>
    %249 = arith.subf %247, %248 : vector<1x1xf32>
    %cst_110 = arith.constant 0.000000e+00 : f32
    %250 = vector.broadcast %cst_110 : f32 to vector<1x1xf32>
    %251 = arith.maximumf %249, %250 : vector<1x1xf32>
    %252 = vector.broadcast %242 : vector<1x1xf32> to vector<1x128xf32>
    %253 = arith.subf %238, %252 : vector<1x128xf32>
    %cst_111 = arith.constant 9.99999974E-6 : f32
    %254 = vector.broadcast %cst_111 : f32 to vector<1x1xf32>
    %255 = arith.addf %251, %254 : vector<1x1xf32>
    %256 = math.rsqrt %255 : vector<1x1xf32>
    %257 = vector.broadcast %256 : vector<1x1xf32> to vector<1x128xf32>
    %258 = arith.mulf %253, %257 : vector<1x128xf32>
    %c0_112 = arith.constant 0 : index
    %c0_113 = arith.constant 0 : index
    %c0_114 = arith.constant 0 : index
    %259 = vector.load %arg3[%c0_112, %c0_113, %c0_114] : memref<3x128x128xf32, #tpu.memory_space<vmem>>, vector<1x128x128xf32>
    %260 = vector.shape_cast %259 : vector<1x128x128xf32> to vector<128x128xf32>
    %cst_115 = arith.constant dense<0.000000e+00> : vector<1x128xf32>
    %261 = tpu.matmul %258, %260, %cst_115 {dimension_numbers = #tpu.dot_dimension_numbers<[1], [0], [0], [1], [0, 0, 1, 1], [], []>} : vector<1x128xf32>, vector<128x128xf32>, vector<1x128xf32> -> vector<1x128xf32>
    %c8 = arith.constant 8 : index
    %c0_116 = arith.constant 0 : index
    %262 = vector.load %arg2[%c8, %c0_116] : memref<11x384xf32, #tpu.memory_space<vmem>>, vector<1x128xf32>
    %263 = arith.addf %261, %262 : vector<1x128xf32>
    %cst_117 = arith.constant 0.000000e+00 : f32
    %264 = vector.broadcast %cst_117 : f32 to vector<1x128xf32>
    %265 = arith.maximumf %263, %264 : vector<1x128xf32>
    %cst_118 = arith.constant dense<0.000000e+00> : vector<1xf32>
    %266 = vector.multi_reduction <add>, %265, %cst_118 [1] : vector<1x128xf32> to vector<1xf32>
    %267 = vector.shape_cast %266 : vector<1xf32> to vector<1x1xf32>
    %cst_119 = arith.constant 3.125000e-02 : f32
    %268 = vector.broadcast %cst_119 : f32 to vector<1x1xf32>
    %269 = arith.mulf %267, %268 : vector<1x1xf32>
    %270 = arith.mulf %265, %265 : vector<1x128xf32>
    %cst_120 = arith.constant dense<0.000000e+00> : vector<1xf32>
    %271 = vector.multi_reduction <add>, %270, %cst_120 [1] : vector<1x128xf32> to vector<1xf32>
    %272 = vector.shape_cast %271 : vector<1xf32> to vector<1x1xf32>
    %cst_121 = arith.constant 3.125000e-02 : f32
    %273 = vector.broadcast %cst_121 : f32 to vector<1x1xf32>
    %274 = arith.mulf %272, %273 : vector<1x1xf32>
    %275 = arith.mulf %269, %269 : vector<1x1xf32>
    %276 = arith.subf %274, %275 : vector<1x1xf32>
    %cst_122 = arith.constant 0.000000e+00 : f32
    %277 = vector.broadcast %cst_122 : f32 to vector<1x1xf32>
    %278 = arith.maximumf %276, %277 : vector<1x1xf32>
    %279 = vector.broadcast %269 : vector<1x1xf32> to vector<1x128xf32>
    %280 = arith.subf %265, %279 : vector<1x128xf32>
    %cst_123 = arith.constant 9.99999974E-6 : f32
    %281 = vector.broadcast %cst_123 : f32 to vector<1x1xf32>
    %282 = arith.addf %278, %281 : vector<1x1xf32>
    %283 = math.rsqrt %282 : vector<1x1xf32>
    %284 = vector.broadcast %283 : vector<1x1xf32> to vector<1x128xf32>
    %285 = arith.mulf %280, %284 : vector<1x128xf32>
    %c1_124 = arith.constant 1 : index
    %c0_125 = arith.constant 0 : index
    %c0_126 = arith.constant 0 : index
    %286 = vector.load %arg3[%c1_124, %c0_125, %c0_126] : memref<3x128x128xf32, #tpu.memory_space<vmem>>, vector<1x128x128xf32>
    %287 = vector.shape_cast %286 : vector<1x128x128xf32> to vector<128x128xf32>
    %cst_127 = arith.constant dense<0.000000e+00> : vector<1x128xf32>
    %288 = tpu.matmul %285, %287, %cst_127 {dimension_numbers = #tpu.dot_dimension_numbers<[1], [0], [0], [1], [0, 0, 1, 1], [], []>} : vector<1x128xf32>, vector<128x128xf32>, vector<1x128xf32> -> vector<1x128xf32>
    %c9 = arith.constant 9 : index
    %c0_128 = arith.constant 0 : index
    %289 = vector.load %arg2[%c9, %c0_128] : memref<11x384xf32, #tpu.memory_space<vmem>>, vector<1x128xf32>
    %290 = arith.addf %288, %289 : vector<1x128xf32>
    %cst_129 = arith.constant 0.000000e+00 : f32
    %291 = vector.broadcast %cst_129 : f32 to vector<1x128xf32>
    %292 = arith.maximumf %290, %291 : vector<1x128xf32>
    %cst_130 = arith.constant dense<0.000000e+00> : vector<1xf32>
    %293 = vector.multi_reduction <add>, %292, %cst_130 [1] : vector<1x128xf32> to vector<1xf32>
    %294 = vector.shape_cast %293 : vector<1xf32> to vector<1x1xf32>
    %cst_131 = arith.constant 6.250000e-02 : f32
    %295 = vector.broadcast %cst_131 : f32 to vector<1x1xf32>
    %296 = arith.mulf %294, %295 : vector<1x1xf32>
    %297 = arith.mulf %292, %292 : vector<1x128xf32>
    %cst_132 = arith.constant dense<0.000000e+00> : vector<1xf32>
    %298 = vector.multi_reduction <add>, %297, %cst_132 [1] : vector<1x128xf32> to vector<1xf32>
    %299 = vector.shape_cast %298 : vector<1xf32> to vector<1x1xf32>
    %cst_133 = arith.constant 6.250000e-02 : f32
    %300 = vector.broadcast %cst_133 : f32 to vector<1x1xf32>
    %301 = arith.mulf %299, %300 : vector<1x1xf32>
    %302 = arith.mulf %296, %296 : vector<1x1xf32>
    %303 = arith.subf %301, %302 : vector<1x1xf32>
    %cst_134 = arith.constant 0.000000e+00 : f32
    %304 = vector.broadcast %cst_134 : f32 to vector<1x1xf32>
    %305 = arith.maximumf %303, %304 : vector<1x1xf32>
    %306 = vector.broadcast %296 : vector<1x1xf32> to vector<1x128xf32>
    %307 = arith.subf %292, %306 : vector<1x128xf32>
    %cst_135 = arith.constant 9.99999974E-6 : f32
    %308 = vector.broadcast %cst_135 : f32 to vector<1x1xf32>
    %309 = arith.addf %305, %308 : vector<1x1xf32>
    %310 = math.rsqrt %309 : vector<1x1xf32>
    %311 = vector.broadcast %310 : vector<1x1xf32> to vector<1x128xf32>
    %312 = arith.mulf %307, %311 : vector<1x128xf32>
    %c2_136 = arith.constant 2 : index
    %c0_137 = arith.constant 0 : index
    %c0_138 = arith.constant 0 : index
    %313 = vector.load %arg3[%c2_136, %c0_137, %c0_138] : memref<3x128x128xf32, #tpu.memory_space<vmem>>, vector<1x128x128xf32>
    %314 = vector.shape_cast %313 : vector<1x128x128xf32> to vector<128x128xf32>
    %cst_139 = arith.constant dense<0.000000e+00> : vector<1x128xf32>
    %315 = tpu.matmul %312, %314, %cst_139 {dimension_numbers = #tpu.dot_dimension_numbers<[1], [0], [0], [1], [0, 0, 1, 1], [], []>} : vector<1x128xf32>, vector<128x128xf32>, vector<1x128xf32> -> vector<1x128xf32>
    %c10 = arith.constant 10 : index
    %c0_140 = arith.constant 0 : index
    %316 = vector.load %arg2[%c10, %c0_140] : memref<11x384xf32, #tpu.memory_space<vmem>>, vector<1x128xf32>
    %317 = arith.addf %315, %316 : vector<1x128xf32>
    %c0_141 = arith.constant 0 : index
    %c0_142 = arith.constant 0 : index
    %318 = vector.load %arg9[%c0_141, %c0_142] : memref<1x128xf32, #tpu.memory_space<vmem>>, vector<1x128xf32>
    tpu.vector_store %arg9[%c0_141, %c0_142], %317 {strides = array<i32>} : memref<1x128xf32, #tpu.memory_space<vmem>>, vector<1x128xf32>,
    %319 = vector.extract_strided_slice %317 {offsets = [0, 0], sizes = [1, 1], strides = [1, 1]} : vector<1x128xf32> to vector<1x1xf32>
    %320 = vector.extract_strided_slice %317 {offsets = [0, 1], sizes = [1, 1], strides = [1, 1]} : vector<1x128xf32> to vector<1x1xf32>
    %321 = vector.extract_strided_slice %317 {offsets = [0, 2], sizes = [1, 1], strides = [1, 1]} : vector<1x128xf32> to vector<1x1xf32>
    %322 = vector.extract_strided_slice %317 {offsets = [0, 3], sizes = [1, 1], strides = [1, 1]} : vector<1x128xf32> to vector<1x1xf32>
    %323 = vector.extract_strided_slice %317 {offsets = [0, 4], sizes = [1, 1], strides = [1, 1]} : vector<1x128xf32> to vector<1x1xf32>
    %324 = vector.extract_strided_slice %317 {offsets = [0, 5], sizes = [1, 1], strides = [1, 1]} : vector<1x128xf32> to vector<1x1xf32>
    %325 = vector.broadcast %319 : vector<1x1xf32> to vector<4x128xf32>
    %326 = arith.mulf %325, %16 : vector<4x128xf32>
    %327 = vector.broadcast %320 : vector<1x1xf32> to vector<4x128xf32>
    %328 = arith.mulf %327, %17 : vector<4x128xf32>
    %329 = arith.addf %326, %328 : vector<4x128xf32>
    %330 = vector.broadcast %321 : vector<1x1xf32> to vector<4x128xf32>
    %331 = arith.mulf %330, %18 : vector<4x128xf32>
    %332 = vector.broadcast %322 : vector<1x1xf32> to vector<4x128xf32>
    %333 = arith.mulf %332, %19 : vector<4x128xf32>
    %334 = arith.addf %331, %333 : vector<4x128xf32>
    %335 = arith.addf %329, %334 : vector<4x128xf32>
    %336 = vector.broadcast %323 : vector<1x1xf32> to vector<4x128xf32>
    %337 = arith.mulf %336, %20 : vector<4x128xf32>
    %338 = vector.broadcast %324 : vector<1x1xf32> to vector<4x128xf32>
    %339 = arith.addf %337, %338 : vector<4x128xf32>
    %340 = arith.addf %335, %339 : vector<4x128xf32>
    %c0_143 = arith.constant 0 : index
    %c0_144 = arith.constant 0 : index
    %341 = vector.load %arg10[%c0_143, %c0_144] : memref<4x128xf32, #tpu.memory_space<vmem>>, vector<4x128xf32>
    tpu.vector_store %arg10[%c0_143, %c0_144], %340 {strides = array<i32>} : memref<4x128xf32, #tpu.memory_space<vmem>>, vector<4x128xf32>,
    return
  }
}

</mosaic_0001>

<bundles_post_ra>
// kernel: tpu_custom_call.1
= control target key start
LH: loop header
LB: loop body
LE: loop exit
PB: predicated region body
PF: predicated region fallthrough
CT: control target
= control target key end

     0   :  { %16 = vsyncpa [#allocation9], 0  ;;  %s2910_s0 = inlined_call_operand.hbm [shape: f32[1,512], index: 0, kind: input, shape index: {}]   ;;  %s2911_s1 = inlined_call_operand.hbm [shape: f32[4,128], index: 1, kind: input, shape index: {}]   ;;  %s2912_s2 = inlined_call_operand.hbm [shape: f32[11,384], index: 2, kind: input, shape index: {}]   ;;  %s2913_s3 = inlined_call_operand.hbm [shape: f32[3,128,128], index: 3, kind: input, shape index: {}]   ;;  %s2914_s4 = inlined_call_operand.hbm [shape: bf16[512,384], index: 4, kind: input, shape index: {}]   ;;  %s2915_s5 = inlined_call_operand.hbm [shape: bf16[384,256], index: 5, kind: input, shape index: {}]   ;;  %s2916_s6 = inlined_call_operand.hbm [shape: bf16[256,256], index: 6, kind: input, shape index: {}]   ;;  %s2917_s7 = inlined_call_operand.hbm [shape: bf16[256,128], index: 7, kind: input, shape index: {}]   ;;  %s2918_s8 = inlined_call_operand.hbm [shape: bf16[128,512], index: 8, kind: input, shape index: {}]   ;;  %s2919_s9 = inlined_call_operand.hbm [shape: f32[1,128], index: 9, kind: output, shape index: {0}]   ;;  %s2920_s10 = inlined_call_operand.hbm [shape: f32[4,128], index: 10, kind: output, shape index: {1}]  }
   0x1   :  { %17 = vsyncpa [#allocation12], 0 }
   0x2   :  { %18 = vsyncpa [#allocation15], 0 }
   0x3   :  { %19 = vsyncpa [#allocation10], 0 }
   0x4   :  { %20 = vsyncpa [#allocation18], 0  ;;  %s2350_s13 = smov [#allocation11]   ;;  %s2351_s15 = smov [#allocation8]  }
   0x5   :  { %s37_s14 = sshll.u32 %s2350_s13, 4  ;;  %s27_s16 = sshll.u32 %s2351_s15, 4  ;;  %s38_s14 = int_to_ptr.vmem [resolvable:$true] %s37_s14  ;;  %s28_s16 = int_to_ptr.vmem [resolvable:$true] %s27_s16 }
   0x6   :  { %s2174_s19 = scalar_lea.hbm %s2911_s1, 64 }
   0x7   :  { %p2175_p0 = scmp.ne.s32.totalorder %s2911_s1, %s2174_s19  ;;  %p2178_p1 = scmp.lt.u32.totalorder %s2174_s19, %s2911_s1 }
   0x9   :  { %p2180_p2 = pnand %p2178_p1, %p2175_p0 }
   0xb   :  { %2183 = shalt.err (!%p2180_p2)
}
   0xc   :  { %s2184_s24 = scalar_lea.vmem %s38_s14, 64  ;;  %p2189_p4 = scmp.lt.s32.totalorder %s38_s14, %s38_s14 }
   0xd   :  { %p2185_p3 = scmp.ne.s32.totalorder %s38_s14, %s2184_s24  ;;  %p2190_p5 = scmp.lt.s32.totalorder %s2184_s24, %s2184_s24 }
   0xf   :  { %p2191_p6 = por %p2190_p5, %p2189_p4 }
  0x11   :  { %p2192_p7 = pnand %p2191_p6, %p2185_p3 }
  0x13   :  { %2195 = shalt.err (!%p2192_p7)
}
  0x14   :  { %40 = dma.hbm_to_vmem [thread:$0]  %s2911_s1, 64, %s38_s14, [#allocation12]  }
  0x15   :  { %s2196_s29 = scalar_lea.hbm %s2910_s0, 64 }
  0x16   :  { %p2197_p8 = scmp.ne.s32.totalorder %s2910_s0, %s2196_s29  ;;  %p2200_p9 = scmp.lt.u32.totalorder %s2196_s29, %s2910_s0 }
  0x18   :  { %p2202_p10 = pnand %p2200_p9, %p2197_p8 }
  0x1a   :  { %2205 = shalt.err (!%p2202_p10)
}
  0x1b   :  { %s2206_s15 = scalar_lea.vmem %s28_s16, 64  ;;  %p2211_p12 = scmp.lt.s32.totalorder %s28_s16, %s28_s16 }
  0x1c   :  { %p2207_p11 = scmp.ne.s32.totalorder %s28_s16, %s2206_s15  ;;  %p2212_p13 = scmp.lt.s32.totalorder %s2206_s15, %s2206_s15 }
  0x1e   :  { %p2213_p0 = por %p2212_p13, %p2211_p12 }
  0x20   :  { %p2214_p1 = pnand %p2213_p0, %p2207_p11 }
  0x22   :  { %2217 = shalt.err (!%p2214_p1)
}
  0x23   :  { %30 = dma.hbm_to_vmem [thread:$0]  %s2910_s0, 64, %s28_s16, [#allocation9]  }
  0x24   :  { %s2352_s17 = smov [#allocation13]   ;;  %s2218_s21 = scalar_lea.hbm %s2912_s2, 768 }
  0x25   :  { %s46_s18 = sshll.u32 %s2352_s17, 4  ;;  %p2219_p2 = scmp.ne.s32.totalorder %s2912_s2, %s2218_s21  ;;  %s47_s18 = int_to_ptr.vmem [resolvable:$true] %s46_s18 }
  0x26   :  { %p2222_p3 = scmp.lt.u32.totalorder %s2218_s21, %s2912_s2 }
  0x28   :  { %p2224_p4 = pnand %p2222_p3, %p2219_p2 }
  0x2a   :  { %2227 = shalt.err (!%p2224_p4)
}
  0x2b   :  { %s2228_s26 = scalar_lea.vmem %s47_s18, 768  ;;  %p2233_p6 = scmp.lt.s32.totalorder %s47_s18, %s47_s18 }
  0x2c   :  { %p2229_p5 = scmp.ne.s32.totalorder %s47_s18, %s2228_s26  ;;  %p2234_p7 = scmp.lt.s32.totalorder %s2228_s26, %s2228_s26 }
  0x2e   :  { %p2235_p8 = por %p2234_p7, %p2233_p6 }
  0x30   :  { %p2236_p9 = pnand %p2235_p8, %p2229_p5 }
  0x32   :  { %2239 = shalt.err (!%p2236_p9)
}
  0x33   :  { %s2353_s0 = smov 384   ;;  %s2354_s16 = smov 24  }
  0x34   :  { %52 = dma.hbm_to_vmem [thread:$0]  %s2912_s2, 768, %s47_s18, [#allocation12], %s2353_s0, %s2353_s0, %s2354_s16  }
  0x35   :  { %s2355_s29 = smov [#allocation14]   ;;  %s2240_s13 = scalar_lea.hbm %s2913_s3, 6144 }
  0x36   :  { %s58_s30 = sshll.u32 %s2355_s29, 4  ;;  %p2241_p10 = scmp.ne.s32.totalorder %s2913_s3, %s2240_s13  ;;  %s59_s30 = int_to_ptr.vmem [resolvable:$true] %s58_s30 }
  0x37   :  { %p2244_p11 = scmp.lt.u32.totalorder %s2240_s13, %s2913_s3 }
  0x39   :  { %p2246_p12 = pnand %p2244_p11, %p2241_p10 }
  0x3b   :  { %2249 = shalt.err (!%p2246_p12)
}
  0x3c   :  { %s2250_s19 = scalar_lea.vmem %s59_s30, 6144  ;;  %p2255_p0 = scmp.lt.s32.totalorder %s59_s30, %s59_s30 }
  0x3d   :  { %p2251_p13 = scmp.ne.s32.totalorder %s59_s30, %s2250_s19  ;;  %p2256_p1 = scmp.lt.s32.totalorder %s2250_s19, %s2250_s19 }
  0x3f   :  { %p2257_p2 = por %p2256_p1, %p2255_p0 }
  0x41   :  { %p2258_p3 = pnand %p2257_p2, %p2251_p13 }
  0x43   :  { %2261 = shalt.err (!%p2258_p3)
}
  0x44   :  { %s2356_s2 = smov 128   ;;  %s2357_s18 = smov 8  }
  0x45   :  { %64 = dma.hbm_to_vmem [thread:$0]  %s2913_s3, 6144, %s59_s30, [#allocation15], %s2356_s2, %s2356_s2, %s2357_s18  }
  0x46   :  { %2328 = dma.done.wait [#allocation9], 64  }
  0x47   :  { %2329 = vsyncadd [#allocation9], 4294967232 }
  0x48   :  { %2330 = dma.done.wait [#allocation12], 832  }
  0x49   :  { %2331 = vsyncadd [#allocation12], 4294966464 }
  0x4a   :  { %2332 = dma.done.wait [#allocation15], 6144  }
  0x4b   :  { %2333 = vsyncadd [#allocation15], 4294961152  ;;  %s82_s22 = sld [smem:[#allocation0]]   ;;  %94 = sst [smem:[#allocation20]] %s2353_s0  ;;  %v274_v0 = vlaneseq }
  0x4c   :  { %96 = sst [smem:[#allocation20 + $0x1]] %s2353_s0  ;;  %s2358_s23 = smov 64  }
  0x4d   :  { %100 = sst [smem:[#allocation20 + $0x3]] %s2358_s23  ;;  %s2359_s24 = smov [#allocation2]  }
  0x4e   :  { %102 = sst [smem:[#allocation20 + $0x4]] %s2356_s2  ;;  %s90_s25 = sshll.u32 %s2359_s24, 4  ;;  %s91_s25 = int_to_ptr.vmem [resolvable:$true] %s90_s25 }
  0x4f   :  { %s2360_s26 = smov 2   ;;  %108 = sst [smem:[#allocation20 + $0x7]] %s2358_s23 }
  0x50   :  { %104 = sst [smem:[#allocation20 + $0x5]] %s2360_s26  ;;  %s2361_s16 = smov 4  }
  0x51   :  { %s1668_s3 = sshll.u32 %s82_s22, 26  ;;  %110 = sst [smem:[#allocation20 + $0x8]] %s2361_s16 }
  0x52   :  { %s2506_s27 = sadd.s32 134217728, %s1668_s3  ;;  %s2362_s28 = smov 3  }
  0x53   :  { %98 = sst [smem:[#allocation20 + $0x2]] %s2362_s28  ;;  %s2363_s29 = smov 192  }
  0x54   :  { %106 = sst [smem:[#allocation20 + $0x6]] %s2363_s29  ;;  %s2364_s30 = smov [#allocation7]  }
  0x55   :  { %s2365_s11 = smov [#allocation19]   ;;  %s2366_s15 = smov [#allocation2 + $0x180]  }
  0x56   :  { %112 = dma.general %s2914_s4, 6144, %s91_s25, %s2364_s30, %s2365_s11, [#allocation20], %s2506_s27, 0  }
  0x57   :  { %131 = sst [smem:[#allocation22]] %s2353_s0  ;;  %s127_s1 = sshll.u32 %s2366_s15, 4  ;;  %s128_s1 = int_to_ptr.vmem [resolvable:$true] %s127_s1 }
  0x58   :  { %133 = sst [smem:[#allocation22 + $0x1]] %s2353_s0  ;;  %s113_s19 = scalar_lea.hbm %s2914_s4, 6144 }
  0x59   :  { %135 = sst [smem:[#allocation22 + $0x2]] %s2362_s28  ;;  %s2367_s0 = smov [#allocation7 + $0x1]  }
  0x5a   :  { %137 = sst [smem:[#allocation22 + $0x3]] %s2358_s23  ;;  %s2368_s18 = smov [#allocation21]  }
  0x5b   :  { %139 = sst [smem:[#allocation22 + $0x4]] %s2356_s2  ;;  %s2369_s20 = smov 256  }
  0x5c   :  { %141 = sst [smem:[#allocation22 + $0x5]] %s2360_s26  ;;  %s2370_s4 = smov [#allocation3]  }
  0x5d   :  { %143 = sst [smem:[#allocation22 + $0x6]] %s2363_s29  ;;  %s162_s21 = sshll.u32 %s2370_s4, 4  ;;  %s163_s21 = int_to_ptr.vmem [resolvable:$true] %s162_s21 }
  0x5e   :  { %145 = sst [smem:[#allocation22 + $0x7]] %s2358_s23  ;;  %s2371_s22 = smov [#allocation7 + $0x2]  }
  0x5f   :  { %147 = sst [smem:[#allocation22 + $0x8]] %s2361_s16  ;;  %s2372_s24 = smov [#allocation23]  }
  0x60   :  { %149 = dma.general %s113_s19, 6144, %s128_s1, %s2367_s0, %s2368_s18, [#allocation22], %s2506_s27, 0  }
  0x61   :  { %166 = sst [smem:[#allocation24]] %s2369_s20  ;;  %s2373_s28 = smov [#allocation4]  }
  0x62   :  { %168 = sst [smem:[#allocation24 + $0x1]] %s2369_s20  ;;  %s197_s29 = sshll.u32 %s2373_s28, 4  ;;  %s198_s29 = int_to_ptr.vmem [resolvable:$true] %s197_s29 }
  0x63   :  { %170 = sst [smem:[#allocation24 + $0x2]] %s2360_s26  ;;  %s2375_s30 = smov [#allocation25]  }
  0x64   :  { %172 = sst [smem:[#allocation24 + $0x3]] %s2358_s23  ;;  %s2376_s13 = smov 512  }
  0x65   :  { %174 = sst [smem:[#allocation24 + $0x4]] %s2356_s2  ;;  %s2377_s15 = smov [#allocation5]  }
  0x66   :  { %176 = sst [smem:[#allocation24 + $0x5]] %s2360_s26  ;;  %s228_s1 = sshll.u32 %s2377_s15, 4  ;;  %s229_s1 = int_to_ptr.vmem [resolvable:$true] %s228_s1 }
  0x67   :  { %178 = sst [smem:[#allocation24 + $0x6]] %s2356_s2  ;;  %s2378_s14 = smov [#allocation6]  }
  0x68   :  { %180 = sst [smem:[#allocation24 + $0x7]] %s2358_s23  ;;  %s2550_s17 = sshll.u32 %s2378_s14, 4  ;;  %s245_s17 = int_to_ptr.vmem [resolvable:$true] %s2550_s17 }
  0x69   :  { %182 = sst [smem:[#allocation24 + $0x8]] %s2361_s16  ;;  %s2262_s0 = scalar_lea.hbm %s2917_s7, 2048 }
  0x6a   :  { %184 = dma.general %s2915_s5, 6144, %s163_s21, %s2371_s22, %s2372_s24, [#allocation24], %s2506_s27, 0  }
  0x6b   :  { %201 = sst [smem:[#allocation26]] %s2369_s20  ;;  %s2374_s5 = smov [#allocation7 + $0x3]  }
  0x6c   :  { %203 = sst [smem:[#allocation26 + $0x1]] %s2369_s20  ;;  %p2263_p4 = scmp.ne.s32.totalorder %s2917_s7, %s2262_s0 }
  0x6d   :  { %205 = sst [smem:[#allocation26 + $0x2]] %s2360_s26  ;;  %p2266_p5 = scmp.lt.u32.totalorder %s2262_s0, %s2917_s7 }
  0x6e   :  { %207 = sst [smem:[#allocation26 + $0x3]] %s2358_s23 }
  0x6f   :  { %209 = sst [smem:[#allocation26 + $0x4]] %s2356_s2  ;;  %p2268_p6 = pnand %p2266_p5, %p2263_p4 }
  0x70   :  { %211 = sst [smem:[#allocation26 + $0x5]] %s2360_s26 }
  0x71   :  { %213 = sst [smem:[#allocation26 + $0x6]] %s2356_s2 }
  0x72   :  { %215 = sst [smem:[#allocation26 + $0x7]] %s2358_s23 }
  0x73   :  { %217 = sst [smem:[#allocation26 + $0x8]] %s2361_s16 }
  0x74   :  { %219 = dma.general %s2916_s6, 4096, %s198_s29, %s2374_s5, %s2375_s30, [#allocation26], %s2506_s27, 0  }
  0x75   :  { %248 = sst [smem:[#allocation32]] %s2376_s13 }
  0x76   :  { %250 = sst [smem:[#allocation32 + $0x1]] %s2376_s13 }
  0x77   :  { %252 = sst [smem:[#allocation32 + $0x2]] %s2361_s16 }
  0x78   :  { %254 = sst [smem:[#allocation32 + $0x3]] %s2358_s23 }
  0x79   :  { %256 = sst [smem:[#allocation32 + $0x4]] %s2356_s2 }
  0x7a   :  { %258 = sst [smem:[#allocation32 + $0x5]] %s2360_s26 }
  0x7b   :  { %260 = sst [smem:[#allocation32 + $0x6]] %s2369_s20 }
  0x7c   :  { %262 = sst [smem:[#allocation32 + $0x7]] %s2358_s23 }
  0x7d   :  { %264 = sst [smem:[#allocation32 + $0x8]] %s2361_s16 }
  0x7e   :  { %2271 = shalt.err (!%p2268_p6)  }
  0x7f   :  { %s2272_s26 = scalar_lea.vmem %s229_s1, 2048  ;;  %p2277_p8 = scmp.lt.s32.totalorder %s229_s1, %s229_s1 }
  0x80   :  { %p2273_p7 = scmp.ne.s32.totalorder %s229_s1, %s2272_s26  ;;  %p2278_p9 = scmp.lt.s32.totalorder %s2272_s26, %s2272_s26 }
  0x82   :  { %p2279_p10 = por %p2278_p9, %p2277_p8 }
  0x84   :  { %p2280_p11 = pnand %p2279_p10, %p2273_p7 }
  0x86   :  { %2283 = shalt.err (!%p2280_p11)  }
  0x87   :  { %231 = dma.hbm_to_vmem [thread:$0]  %s2917_s7, 2048, %s229_s1, [#allocation7 + $0x4]  ;;  %v2575_v1 = vshrl.u32 %v274_v0, 7 }
  0x88   :  { %s2379_s20 = smov [#allocation7 + $0x5]   ;;  %s2380_s22 = smov [#allocation31]  }
  0x89   :  { %266 = dma.general %s2918_s8, 4096, %s245_s17, %s2379_s20, %s2380_s22, [#allocation32], %s2506_s27, 0   ;;  %v2578_v2 = vsub.s32 0, %v2575_v1  ;;  %v2581_v3 = vsub.s32 1, %v2575_v1  ;;  %v2921_v4 = vsub.s32 2, %v2575_v1  ;;  %v288_v5 = vsub.s32 3, %v2575_v1 }
  0x8a   :  { %2930 = vst [vmem:[#allocation44_spill] sm:$0xff] %v2575_v1  ;;  %v2585_v6 = vld [vmem:[#allocation11] sm:$0xf]  ;;  %v272_v7 = vld [vmem:[#allocation8] sm:$0xf] }
  0x8b   :  { %2931 = vst [vmem:[#allocation45_spill] sm:$0xff] %v2578_v2  ;;  %2932 = vst [vmem:[#allocation46_spill] sm:$0xff] %v2581_v3  ;;  %v2589_v8 = vmul.f32 %v2585_v6, %v2585_v6  ;;  %v277_v9 = vrot.slane %v272_v7, %v2578_v2  ;;  %v281_v10 = vrot.slane %v272_v7, %v2581_v3 }
  0x8c   :  { %2933 = vst [vmem:[#allocation47_spill] sm:$0xff] %v2585_v6  ;;  %v285_v11 = vrot.slane %v272_v7, %v2921_v4  ;;  %v289_v12 = vrot.slane %v272_v7, %v288_v5 }
  0x8d   :  { %2934 = vst [vmem:[#allocation48_spill] sm:$0xff] %v2589_v8  ;;  %v2597_v13 = vmul.f32 %v2589_v8, %v2585_v6  ;;  %v2601_v14 = vmul.f32 %v2589_v8, %v2589_v8  ;;  %v2603_v15 = vpack.c.bf16 %v277_v9, %v277_v9  ;;  %v2605_v16 = vpack.c.bf16 %v281_v10, %v281_v10 }
  0x8e   :  { %v2607_v17 = vpack.c.bf16 %v285_v11, %v285_v11  ;;  %v297_v18 = vpack.c.bf16 %v289_v12, %v289_v12 }
  0x8f   :  { %2935 = vst [vmem:[#allocation49_spill] sm:$0xff] %v2597_v13  ;;  %2936 = vst [vmem:[#allocation50_spill] sm:$0xff] %v2601_v14  ;;  %v2611_v19 = vmul.f32 %v2601_v14, %v2585_v6 }
  0x91   :  { %2937 = vst [vmem:[#allocation51_spill] sm:$0xff] %v2611_v19 }
  0x92   :  { %2334 = dma.done.wait [#allocation7], 6144 }
  0x93   :  { %2335 = vsyncadd [#allocation7], 4294961152  ;;  %v2613_v20 = vld [vmem:[#allocation2] sm:$0xff]  ;;  %v2615_v21 = vld [vmem:[#allocation2 + $0x8] sm:$0xff] }
  0x94   :  { %v2617_v22 = vld [vmem:[#allocation2 + $0x10] sm:$0xff]  ;;  %v2619_v23 = vld [vmem:[#allocation2 + $0x18] sm:$0xff]  ;;  %v2621_v24 = vld [vmem:[#allocation2 + $0x20] sm:$0xff] }
  0x95   :  { %v2623_v25 = vld [vmem:[#allocation2 + $0x28] sm:$0xff]  ;;  %v2625_v26 = vld [vmem:[#allocation2 + $0x30] sm:$0xff]  ;;  %v2627_v27 = vld [vmem:[#allocation2 + $0x38] sm:$0xff] }
  0x96   :  { %v2629_v28 = vld [vmem:[#allocation2 + $0x40] sm:$0xff]  ;;  %v2631_v29 = vld [vmem:[#allocation2 + $0x48] sm:$0xff]  ;;  %v2633_v30 = vld [vmem:[#allocation2 + $0x50] sm:$0xff] }
  0x97   :  { %v2635_v31 = vld [vmem:[#allocation2 + $0x58] sm:$0xff]  ;;  %v2637_v32 = vld [vmem:[#allocation2 + $0x60] sm:$0xff]  ;;  %v2639_v33 = vld [vmem:[#allocation2 + $0x68] sm:$0xff] }
  0x98   :  { %v2641_v34 = vld [vmem:[#allocation2 + $0x70] sm:$0xff]  ;;  %v2643_v35 = vld [vmem:[#allocation2 + $0x78] sm:$0xff]  ;;  %v2645_v36 = vld [vmem:[#allocation2 + $0x80] sm:$0xff] }
  0x99   :  { %v2647_v37 = vld [vmem:[#allocation2 + $0x88] sm:$0xff]  ;;  %v2649_v38 = vld [vmem:[#allocation2 + $0x90] sm:$0xff]  ;;  %v2651_v39 = vld [vmem:[#allocation2 + $0x98] sm:$0xff] }
  0x9a   :  { %v2653_v40 = vld [vmem:[#allocation2 + $0xa0] sm:$0xff]  ;;  %v2655_v41 = vld [vmem:[#allocation2 + $0xa8] sm:$0xff]  ;;  %v2657_v42 = vld [vmem:[#allocation2 + $0xb0] sm:$0xff] }
  0x9b   :  { %v2659_v43 = vld [vmem:[#allocation2 + $0xb8] sm:$0xff]  ;;  %v2661_v44 = vld [vmem:[#allocation2 + $0xc0] sm:$0xff]  ;;  %v2663_v45 = vld [vmem:[#allocation2 + $0xc8] sm:$0xff] }
  0x9c   :  { %v2665_v46 = vld [vmem:[#allocation2 + $0xd0] sm:$0xff]  ;;  %v2667_v47 = vld [vmem:[#allocation2 + $0xd8] sm:$0xff]  ;;  %v2669_v48 = vld [vmem:[#allocation2 + $0xe0] sm:$0xff] }
  0x9d   :  { %v2671_v49 = vld [vmem:[#allocation2 + $0xe8] sm:$0xff]  ;;  %v2673_v50 = vld [vmem:[#allocation2 + $0xf0] sm:$0xff]  ;;  %v2675_v51 = vld [vmem:[#allocation2 + $0xf8] sm:$0xff] }
  0x9e   :  { %v2677_v52 = vld [vmem:[#allocation2 + $0x100] sm:$0xff]  ;;  %v2679_v53 = vld [vmem:[#allocation2 + $0x108] sm:$0xff]  ;;  %v2681_v54 = vld [vmem:[#allocation2 + $0x110] sm:$0xff] }
  0x9f   :  { %v2683_v55 = vld [vmem:[#allocation2 + $0x118] sm:$0xff]  ;;  %v2685_v56 = vld [vmem:[#allocation2 + $0x120] sm:$0xff]  ;;  %v2687_v57 = vld [vmem:[#allocation2 + $0x128] sm:$0xff] }
  0xa0   :  { %v2689_v58 = vld [vmem:[#allocation2 + $0x130] sm:$0xff]  ;;  %v2691_v59 = vld [vmem:[#allocation2 + $0x138] sm:$0xff]  ;;  %v2693_v60 = vld [vmem:[#allocation2 + $0x140] sm:$0xff] }
  0xa1   :  { %v2695_v61 = vld [vmem:[#allocation2 + $0x148] sm:$0xff]  ;;  %v2697_v62 = vld [vmem:[#allocation2 + $0x150] sm:$0xff]  ;;  %v2699_v63 = vld [vmem:[#allocation2 + $0x158] sm:$0xff] }
  0xa2   :  { %v2701_v0 = vld [vmem:[#allocation2 + $0x160] sm:$0xff]  ;;  %v2703_v5 = vld [vmem:[#allocation2 + $0x168] sm:$0xff]  ;;  %v2705_v7 = vld [vmem:[#allocation2 + $0x170] sm:$0xff] }
  0xa3   :  { %v2707_v9 = vld [vmem:[#allocation2 + $0x178] sm:$0xff] }
  0xa4   :  { %2336 = dma.done.wait [#allocation7 + $0x1], 6144 }
  0xa5   :  { %2337 = vsyncadd [#allocation7 + $0x1], 4294961152  ;;  %473 = vmatprep.mubr.bf16.mxu1 %v297_v18  ;;  %432 = vmatprep.mubr.bf16.mxu0 %v297_v18  ;;  %v353_v10 = vld [vmem:[#allocation2 + $0x188] sm:$0xff]  ;;  %v378_v11 = vld [vmem:[#allocation2 + $0x250] sm:$0xff]  ;;  %vm585_vm0 = vcmask 1040384  }
  0xa6   :  { %v352_v12 = vld [vmem:[#allocation2 + $0x180] sm:$0xff]  ;;  %400 = vmatprep.subr.bf16.mxu0 %v353_v10  ;;  %1684 = vmatprep.subr.bf16.mxu1 %v378_v11  ;;  %v354_v4 = vld [vmem:[#allocation2 + $0x190] sm:$0xff]  ;;  %v381_v6 = vld [vmem:[#allocation2 + $0x268] sm:$0xff] }
  0xa7   :  { %v356_v19 = vld [vmem:[#allocation2 + $0x1a0] sm:$0xff]  ;;  %401 = vmatpush1.bf16.msra.mxu0 %v352_v12  ;;  %1685 = vmatpush3.bf16.msra.mxu1 %v354_v4  ;;  %v355_v14 = vld [vmem:[#allocation2 + $0x198] sm:$0xff]  ;;  %v357_v13 = vld [vmem:[#allocation2 + $0x1a8] sm:$0xff] }
  0xa8   :  { %402 = vmatprep.subr.bf16.mxu0 %v356_v19  ;;  %1686 = vmatprep.subr.bf16.mxu1 %v381_v6  ;;  %v359_v8 = vld [vmem:[#allocation2 + $0x1b8] sm:$0xff]  ;;  %v384_v1 = vld [vmem:[#allocation2 + $0x280] sm:$0xff]  ;;  %v358_v18 = vld [vmem:[#allocation2 + $0x1b0] sm:$0xff] }
  0xa9   :  { %v360_v3 = vld [vmem:[#allocation2 + $0x1c0] sm:$0xff]  ;;  %v362_v2 = vld [vmem:[#allocation2 + $0x1d0] sm:$0xff]  ;;  %v387_v10 = vld [vmem:[#allocation2 + $0x298] sm:$0xff] }
  0xaa   :  { %v361_v11 = vld [vmem:[#allocation2 + $0x1c8] sm:$0xff]  ;;  %v363_v4 = vld [vmem:[#allocation2 + $0x1d8] sm:$0xff]  ;;  %v390_v6 = vld [vmem:[#allocation2 + $0x2b0] sm:$0xff] }
  0xab   :  { %403 = vmatpush1.bf16.msra.mxu0 %v355_v14  ;;  %1687 = vmatpush3.bf16.msra.mxu1 %v357_v13  ;;  %v365_v19 = vld [vmem:[#allocation2 + $0x1e8] sm:$0xff]  ;;  %v364_v14 = vld [vmem:[#allocation2 + $0x1e0] sm:$0xff]  ;;  %v366_v13 = vld [vmem:[#allocation2 + $0x1f0] sm:$0xff] }
  0xac   :  { %404 = vmatprep.subr.bf16.mxu0 %v359_v8  ;;  %1688 = vmatprep.subr.bf16.mxu1 %v384_v1  ;;  %v368_v8 = vld [vmem:[#allocation2 + $0x200] sm:$0xff]  ;;  %v393_v1 = vld [vmem:[#allocation2 + $0x2c8] sm:$0xff]  ;;  %v367_v12 = vld [vmem:[#allocation2 + $0x1f8] sm:$0xff] }
  0xaf   :  { %405 = vmatpush1.bf16.msra.mxu0 %v358_v18  ;;  %1689 = vmatpush3.bf16.msra.mxu1 %v360_v3  ;;  %v369_v3 = vld [vmem:[#allocation2 + $0x208] sm:$0xff]  ;;  %v396_v18 = vld [vmem:[#allocation2 + $0x2e0] sm:$0xff] }
  0xb0   :  { %406 = vmatprep.subr.bf16.mxu0 %v362_v2  ;;  %1690 = vmatprep.subr.bf16.mxu1 %v387_v10  ;;  %v371_v2 = vld [vmem:[#allocation2 + $0x218] sm:$0xff]  ;;  %v370_v10 = vld [vmem:[#allocation2 + $0x210] sm:$0xff] }
  0xb3   :  { %407 = vmatpush1.bf16.msra.mxu0 %v361_v11  ;;  %1691 = vmatpush3.bf16.msra.mxu1 %v363_v4  ;;  %v372_v11 = vld [vmem:[#allocation2 + $0x220] sm:$0xff]  ;;  %v374_v4 = vld [vmem:[#allocation2 + $0x230] sm:$0xff] }
  0xb4   :  { %408 = vmatprep.subr.bf16.mxu0 %v365_v19  ;;  %1692 = vmatprep.subr.bf16.mxu1 %v390_v6  ;;  %v399_v19 = vld [vmem:[#allocation2 + $0x2f8] sm:$0xff]  ;;  %v373_v6 = vld [vmem:[#allocation2 + $0x228] sm:$0xff] }
  0xb7   :  { %409 = vmatpush1.bf16.msra.mxu0 %v364_v14  ;;  %1693 = vmatpush3.bf16.msra.mxu1 %v366_v13  ;;  %v375_v14 = vld [vmem:[#allocation2 + $0x238] sm:$0xff]  ;;  %v377_v13 = vld [vmem:[#allocation2 + $0x248] sm:$0xff] }
  0xb8   :  { %410 = vmatprep.subr.bf16.mxu0 %v368_v8  ;;  %1694 = vmatprep.subr.bf16.mxu1 %v393_v1  ;;  %v376_v8 = vld [vmem:[#allocation2 + $0x240] sm:$0xff] }
  0xb9   :  { %v380_v1 = vld [vmem:[#allocation2 + $0x260] sm:$0xff] }
  0xbb   :  { %411 = vmatpush1.bf16.msra.mxu0 %v367_v12  ;;  %1695 = vmatpush3.bf16.msra.mxu1 %v369_v3  ;;  %v379_v12 = vld [vmem:[#allocation2 + $0x258] sm:$0xff] }
  0xbc   :  { %412 = vmatprep.subr.bf16.mxu0 %v371_v2  ;;  %1696 = vmatprep.subr.bf16.mxu1 %v396_v18  ;;  %v383_v3 = vld [vmem:[#allocation2 + $0x278] sm:$0xff]  ;;  %v386_v2 = vld [vmem:[#allocation2 + $0x290] sm:$0xff]  ;;  %v392_v18 = vld [vmem:[#allocation2 + $0x2c0] sm:$0xff] }
  0xbf   :  { %413 = vmatpush1.bf16.msra.mxu0 %v370_v10  ;;  %1697 = vmatpush3.bf16.msra.mxu1 %v372_v11 }
  0xc0   :  { %414 = vmatprep.subr.bf16.mxu0 %v374_v4  ;;  %1698 = vmatprep.subr.bf16.mxu1 %v399_v19 }
  0xc3   :  { %415 = vmatpush1.bf16.msra.mxu0 %v373_v6  ;;  %1699 = vmatpush3.bf16.msra.mxu1 %v375_v14 }
  0xc4   :  { %416 = vmatprep.subr.bf16.mxu0 %v377_v13  ;;  %481 = vmatprep.subr.bf16.mxu1 %v2615_v21  ;;  %v382_v21 = vld [vmem:[#allocation2 + $0x270] sm:$0xff] }
  0xc6   :  { %474 = vmatmul.mubr.bf16.vlgmr.msra.gmra.mrb[0].mxu1 %v2607_v17 }
  0xc7   :  { %417 = vmatpush1.bf16.msra.mxu0 %v376_v8  ;;  %482 = vmatpush1.bf16.msra.mxu1 %v2613_v20  ;;  %v385_v20 = vld [vmem:[#allocation2 + $0x288] sm:$0xff] }
  0xc8   :  { %418 = vmatprep.subr.bf16.mxu0 %v380_v1  ;;  %483 = vmatprep.subr.bf16.mxu1 %v2621_v24  ;;  %v389_v24 = vld [vmem:[#allocation2 + $0x2a8] sm:$0xff] }
  0xc9   :  { %513 = vmatprep.mubr.bf16.mxu1 %v2605_v16 }
  0xcb   :  { %419 = vmatpush1.bf16.msra.mxu0 %v379_v12  ;;  %484 = vmatpush1.bf16.msra.mxu1 %v2619_v23  ;;  %v388_v23 = vld [vmem:[#allocation2 + $0x2a0] sm:$0xff] }
  0xcc   :  { %420 = vmatprep.subr.bf16.mxu0 %v383_v3  ;;  %485 = vmatprep.subr.bf16.mxu1 %v2627_v27  ;;  %v395_v27 = vld [vmem:[#allocation2 + $0x2d8] sm:$0xff] }
  0xcf   :  { %421 = vmatpush1.bf16.msra.mxu0 %v382_v21  ;;  %486 = vmatpush1.bf16.msra.mxu1 %v2625_v26  ;;  %v391_v26 = vld [vmem:[#allocation2 + $0x2b8] sm:$0xff] }
  0xd0   :  { %422 = vmatprep.subr.bf16.mxu0 %v386_v2  ;;  %487 = vmatprep.subr.bf16.mxu1 %v2633_v30  ;;  %v398_v30 = vld [vmem:[#allocation2 + $0x2f0] sm:$0xff] }
  0xd3   :  { %423 = vmatpush1.bf16.msra.mxu0 %v385_v20  ;;  %488 = vmatpush1.bf16.msra.mxu1 %v2631_v29  ;;  %v394_v29 = vld [vmem:[#allocation2 + $0x2d0] sm:$0xff] }
  0xd4   :  { %424 = vmatprep.subr.bf16.mxu0 %v389_v24  ;;  %489 = vmatprep.subr.bf16.mxu1 %v2639_v33 }
  0xd7   :  { %425 = vmatpush1.bf16.msra.mxu0 %v388_v23  ;;  %490 = vmatpush1.bf16.msra.mxu1 %v2637_v32  ;;  %v397_v32 = vld [vmem:[#allocation2 + $0x2e8] sm:$0xff] }
  0xd8   :  { %426 = vmatprep.subr.bf16.mxu0 %v392_v18  ;;  %491 = vmatprep.subr.bf16.mxu1 %v2645_v36  ;;  %v562_v36 = vld [vmem:[#allocation13] ss:$8 sm:$0x7] }
  0xdb   :  { %427 = vmatpush1.bf16.msra.mxu0 %v391_v26  ;;  %492 = vmatpush1.bf16.msra.mxu1 %v2643_v35 }
  0xdc   :  { %428 = vmatprep.subr.bf16.mxu0 %v395_v27  ;;  %493 = vmatprep.subr.bf16.mxu1 %v2651_v39 }
  0xdf   :  { %429 = vmatpush1.bf16.msra.mxu0 %v394_v29  ;;  %494 = vmatpush1.bf16.msra.mxu1 %v2649_v38 }
  0xe0   :  { %430 = vmatprep.subr.bf16.mxu0 %v398_v30  ;;  %495 = vmatprep.subr.bf16.mxu1 %v2657_v42 }
  0xe3   :  { %431 = vmatpush1.bf16.msra.mxu0 %v397_v32  ;;  %496 = vmatpush1.bf16.msra.mxu1 %v2655_v41  ;;  %v2939_v41 = vld [vmem:[#allocation46_spill] sm:$0xff] }
  0xe4   :  { %497 = vmatprep.subr.bf16.mxu1 %v2663_v45  ;;  %1706 = vmatprep.subr.bf16.mxu0 %v2665_v46  ;;  %v571_v42 = vrot.slane %v562_v36, %v2939_v41 }
  0xe6   :  { %433 = vmatmul.mubr.bf16.vlgmr.msra.gmra.mrb[0].mxu0 %v2607_v17 }
  0xe7   :  { %498 = vmatpush1.bf16.msra.mxu1 %v2661_v44  ;;  %1707 = vmatpush3.bf16.msra.mxu0 %v2617_v22 }
  0xe8   :  { %499 = vmatprep.subr.bf16.mxu1 %v2669_v48  ;;  %1708 = vmatprep.subr.bf16.mxu0 %v2671_v49 }
  0xe9   :  { %554 = vmatprep.mubr.bf16.mxu0 %v2605_v16 }
  0xeb   :  { %500 = vmatpush1.bf16.msra.mxu1 %v2667_v47  ;;  %1709 = vmatpush3.bf16.msra.mxu0 %v2623_v25  ;;  %v2940_v47 = vld [vmem:[#allocation44_spill] sm:$0xff] }
  0xec   :  { %501 = vmatprep.subr.bf16.mxu1 %v2675_v51  ;;  %1710 = vmatprep.subr.bf16.mxu0 %v2677_v52  ;;  %v2941_v48 = vsub.s32 2, %v2940_v47 }
  0xee   :  { %v575_v49 = vrot.slane %v562_v36, %v2941_v48 }
  0xef   :  { %502 = vmatpush1.bf16.msra.mxu1 %v2673_v50  ;;  %1711 = vmatpush3.bf16.msra.mxu0 %v2629_v28 }
  0xf0   :  { %503 = vmatprep.subr.bf16.mxu1 %v2681_v54  ;;  %1712 = vmatprep.subr.bf16.mxu0 %v2683_v55 }
  0xf3   :  { %504 = vmatpush1.bf16.msra.mxu1 %v2679_v53  ;;  %1713 = vmatpush3.bf16.msra.mxu0 %v2635_v31 }
  0xf4   :  { %505 = vmatprep.subr.bf16.mxu1 %v2687_v57  ;;  %1714 = vmatprep.subr.bf16.mxu0 %v2689_v58 }
  0xf7   :  { %506 = vmatpush1.bf16.msra.mxu1 %v2685_v56  ;;  %1715 = vmatpush3.bf16.msra.mxu0 %v2641_v34 }
  0xf8   :  { %507 = vmatprep.subr.bf16.mxu1 %v2693_v60  ;;  %1716 = vmatprep.subr.bf16.mxu0 %v2695_v61 }
  0xfb   :  { %508 = vmatpush1.bf16.msra.mxu1 %v2691_v59  ;;  %1717 = vmatpush3.bf16.msra.mxu0 %v2647_v37  ;;  %v2938_v37 = vld [vmem:[#allocation45_spill] sm:$0xff] }
  0xfc   :  { %509 = vmatprep.subr.bf16.mxu1 %v2699_v63  ;;  %1718 = vmatprep.subr.bf16.mxu0 %v2701_v0  ;;  %v567_v38 = vrot.slane %v562_v36, %v2938_v37 }
  0xff   :  { %510 = vmatpush1.bf16.msra.mxu1 %v2697_v62  ;;  %1719 = vmatpush3.bf16.msra.mxu0 %v2653_v40 }
 0x100   :  { %511 = vmatprep.subr.bf16.mxu1 %v2705_v7  ;;  %1720 = vmatprep.subr.bf16.mxu0 %v2707_v9 }
 0x103   :  { %512 = vmatpush1.bf16.msra.mxu1 %v2703_v5  ;;  %1721 = vmatpush3.bf16.msra.mxu0 %v2659_v43 }
 0x106   :  { %514 = vmatmul.mubr.bf16.vlgmr.msra.gmra.mrb[4].mxu1 %v2603_v15  ;;  %555 = vmatmul.mubr.bf16.vlgmr.msra.gmra.mrb[4].mxu0 %v2603_v15 }
 0x199   :  { %v1700_v16 = vpop.f32.mrb[0].mxu1 }
 0x19a   :  { %v1701_v17 = vpop.f32.mrb[1].mxu1 }
 0x19b   :  { %v1702_v22 = vadd.f32 %v1701_v17, %v1700_v16  ;;  %v1703_v25 = vpop.f32.mrb[2].mxu1 }
 0x19c   :  { %v1704_v28 = vpop.f32.mrb[3].mxu1 }
 0x1b9   :  { %v434_v31 = vpop.f32.mrb[0].mxu0 }
 0x1ba   :  { %v436_v33 = vpop.f32.mrb[1].mxu0 }
 0x1bb   :  { %v438_v34 = vpop.f32.mrb[2].mxu0 }
 0x1bc   :  { %v439_v35 = vpop.f32.mrb[3].mxu0 }
 0x1d9   :  { %v515_v39 = vpop.f32.mrb[4].mxu1  ;;  %v1722_v40 = vpop.f32.mrb[4].mxu0 }
 0x1da   :  { %v516_v43 = vadd.f32 %v515_v39, %v434_v31  ;;  %v517_v44 = vpop.f32.mrb[5].mxu1  ;;  %v1723_v45 = vpop.f32.mrb[5].mxu0 }
 0x1db   :  { %v518_v15 = vadd.f32 %v517_v44, %v436_v33  ;;  %v1724_v46 = vadd.f32 %v1723_v45, %v1722_v40  ;;  %v519_v50 = vpop.f32.mrb[6].mxu1  ;;  %v1725_v51 = vpop.f32.mrb[6].mxu0 }
 0x1dc   :  { %v579_v52 = vadd.f32 %v567_v38, %v516_v43  ;;  %v520_v53 = vpop.f32.mrb[7].mxu1  ;;  %v1726_v54 = vpop.f32.mrb[7].mxu0 }
 0x1dd   :  { %v580_v55 = vadd.f32 %v571_v42, %v518_v15  ;;  %v557_v56 = vadd.f32 %v1724_v46, %v1702_v22 }
 0x1de   :  { %v582_v57 = vmax.f32 %v579_v52, 0.0 }
 0x1df   :  { %v583_v58 = vmax.f32 %v580_v55, 0.0  ;;  %v581_v59 = vadd.f32 %v575_v49, %v557_v56 }
 0x1e0   :  { %v586_v60 = vsel %vm585_vm0, %v582_v57, 0.0  ;;  %v594_v61 = vmul.f32 %v582_v57, %v582_v57 }
 0x1e1   :  { %v584_v62 = vmax.f32 %v581_v59, 0.0  ;;  %v587_v63 = vsel %vm585_vm0, %v583_v58, 0.0  ;;  %v595_v0 = vmul.f32 %v583_v58, %v583_v58 }
 0x1e2   :  { %v588_v5 = vadd.f32 %v587_v63, %v586_v60  ;;  %v597_v7 = vsel %vm585_vm0, %v594_v61, 0.0 }
 0x1e3   :  { %v589_v9 = vsel %vm585_vm0, %v584_v62, 0.0  ;;  %v596_v10 = vmul.f32 %v584_v62, %v584_v62  ;;  %v598_v11 = vsel %vm585_vm0, %v595_v0, 0.0 }
 0x1e4   :  { %v590_v4 = vadd.f32 %v589_v9, %v588_v5  ;;  %v599_v19 = vadd.f32 %v598_v11, %v597_v7 }
 0x1e5   :  { %v600_v6 = vsel %vm585_vm0, %v596_v10, 0.0 }
 0x1e6   :  { %591 = vadd.xlane.f32.xlu0 %v590_v4  ;;  %v601_v14 = vadd.f32 %v600_v6, %v599_v19 }
 0x1ea   :  { %602 = vadd.xlane.f32.xlu0 %v601_v14 }
 0x273   :  { %v592_v13 = vpop.xlane.xlu0 %591 }
 0x274   :  { %v593_v8 = vmul.f32 0.0026041667, %v592_v13 }
 0x276   :  { %v605_v12 = vmul.f32 %v593_v8, %v593_v8  ;;  %v608_v24 = vsub.f32 %v582_v57, %v593_v8  ;;  %v609_v23 = vsub.f32 %v583_v58, %v593_v8  ;;  %v610_v18 = vsub.f32 %v584_v62, %v593_v8 }
 0x277   :  { %v603_v1 = vpop.xlane.xlu0 %602 }
 0x278   :  { %v604_v3 = vmul.f32 0.0026041667, %v603_v1 }
 0x27a   :  { %v606_v21 = vsub.f32 %v604_v3, %v605_v12 }
 0x27c   :  { %v607_v2 = vmax.f32 %v606_v21, 0.0 }
 0x27e   :  { %v611_v20 = vadd.f32 1e-05, %v607_v2 }
 0x280   :  { %2154 = vrsqrt.f32 %v611_v20 }
 0x28a   :  { %v2155_v26 = vpop.eup %2154 }
 0x28b   :  { %v2773_v27 = vmul.f32 %v2155_v26, %v608_v24  ;;  %v614_v29 = vmul.f32 %v2155_v26, %v609_v23  ;;  %v2775_v30 = vmul.f32 %v2155_v26, %v610_v18 }
 0x28c   :  { %2338 = dma.done.wait [#allocation7 + $0x2], 6144 }
 0x28d   :  { %2339 = vsyncadd [#allocation7 + $0x2], 4294961152  ;;  %v621_v32 = vpack.c.bf16 %v614_v29, %v614_v29  ;;  %v624_v16 = vld [vmem:[#allocation3 + $0x8] sm:$0xff]  ;;  %v623_v17 = vld [vmem:[#allocation3] sm:$0xff]  ;;  %v620_v61 = vpack.c.bf16 %v2773_v27, %v2773_v27  ;;  %v2381_v0 = vmov 0   ;;  %v622_v3 = vpack.c.bf16 %v2775_v30, %v2775_v30 }
 0x28e   :  { %v626_v22 = vld [vmem:[#allocation3 + $0x18] sm:$0xff]  ;;  %684 = vmatprep.subr.bf16.mxu0 %v624_v16  ;;  %v625_v25 = vld [vmem:[#allocation3 + $0x10] sm:$0xff]  ;;  %v628_v28 = vld [vmem:[#allocation3 + $0x28] sm:$0xff] }
 0x28f   :  { %716 = vmatprep.mubr.bf16.mxu0 %v621_v32  ;;  %685 = vmatpush1.bf16.msra.mxu0 %v623_v17  ;;  %v627_v31 = vld [vmem:[#allocation3 + $0x20] sm:$0xff]  ;;  %v630_v33 = vld [vmem:[#allocation3 + $0x38] sm:$0xff]  ;;  %v629_v34 = vld [vmem:[#allocation3 + $0x30] sm:$0xff] }
 0x290   :  { %686 = vmatprep.subr.bf16.mxu0 %v626_v22  ;;  %v632_v35 = vld [vmem:[#allocation3 + $0x48] sm:$0xff]  ;;  %v631_v36 = vld [vmem:[#allocation3 + $0x40] sm:$0xff]  ;;  %v634_v38 = vld [vmem:[#allocation3 + $0x58] sm:$0xff] }
 0x291   :  { %v633_v39 = vld [vmem:[#allocation3 + $0x50] sm:$0xff]  ;;  %v636_v40 = vld [vmem:[#allocation3 + $0x68] sm:$0xff]  ;;  %v635_v42 = vld [vmem:[#allocation3 + $0x60] sm:$0xff] }
 0x292   :  { %v638_v43 = vld [vmem:[#allocation3 + $0x78] sm:$0xff]  ;;  %v637_v44 = vld [vmem:[#allocation3 + $0x70] sm:$0xff]  ;;  %v640_v45 = vld [vmem:[#allocation3 + $0x88] sm:$0xff] }
 0x293   :  { %687 = vmatpush1.bf16.msra.mxu0 %v625_v25  ;;  %v639_v15 = vld [vmem:[#allocation3 + $0x80] sm:$0xff]  ;;  %v642_v46 = vld [vmem:[#allocation3 + $0x98] sm:$0xff]  ;;  %v641_v47 = vld [vmem:[#allocation3 + $0x90] sm:$0xff] }
 0x294   :  { %688 = vmatprep.subr.bf16.mxu0 %v628_v28  ;;  %v644_v48 = vld [vmem:[#allocation3 + $0xa8] sm:$0xff]  ;;  %v643_v49 = vld [vmem:[#allocation3 + $0xa0] sm:$0xff]  ;;  %v646_v50 = vld [vmem:[#allocation3 + $0xb8] sm:$0xff] }
 0x295   :  { %v645_v51 = vld [vmem:[#allocation3 + $0xb0] sm:$0xff]  ;;  %v648_v52 = vld [vmem:[#allocation3 + $0xc8] sm:$0xff]  ;;  %v647_v53 = vld [vmem:[#allocation3 + $0xc0] sm:$0xff] }
 0x296   :  { %v650_v54 = vld [vmem:[#allocation3 + $0xd8] sm:$0xff]  ;;  %v649_v55 = vld [vmem:[#allocation3 + $0xd0] sm:$0xff]  ;;  %v652_v56 = vld [vmem:[#allocation3 + $0xe8] sm:$0xff] }
 0x297   :  { %689 = vmatpush1.bf16.msra.mxu0 %v627_v31  ;;  %v651_v57 = vld [vmem:[#allocation3 + $0xe0] sm:$0xff]  ;;  %v654_v58 = vld [vmem:[#allocation3 + $0xf8] sm:$0xff]  ;;  %v653_v59 = vld [vmem:[#allocation3 + $0xf0] sm:$0xff] }
 0x298   :  { %690 = vmatprep.subr.bf16.mxu0 %v630_v33  ;;  %v656_v60 = vld [vmem:[#allocation3 + $0x108] sm:$0xff]  ;;  %v655_v62 = vld [vmem:[#allocation3 + $0x100] sm:$0xff]  ;;  %v658_v63 = vld [vmem:[#allocation3 + $0x118] sm:$0xff] }
 0x299   :  { %v657_v5 = vld [vmem:[#allocation3 + $0x110] sm:$0xff]  ;;  %v660_v7 = vld [vmem:[#allocation3 + $0x128] sm:$0xff]  ;;  %v659_v9 = vld [vmem:[#allocation3 + $0x120] sm:$0xff] }
 0x29a   :  { %v662_v10 = vld [vmem:[#allocation3 + $0x138] sm:$0xff]  ;;  %v661_v11 = vld [vmem:[#allocation3 + $0x130] sm:$0xff]  ;;  %v664_v4 = vld [vmem:[#allocation3 + $0x148] sm:$0xff] }
 0x29b   :  { %691 = vmatpush1.bf16.msra.mxu0 %v629_v34  ;;  %v663_v19 = vld [vmem:[#allocation3 + $0x140] sm:$0xff]  ;;  %v666_v6 = vld [vmem:[#allocation3 + $0x158] sm:$0xff]  ;;  %v665_v14 = vld [vmem:[#allocation3 + $0x150] sm:$0xff] }
 0x29c   :  { %692 = vmatprep.subr.bf16.mxu0 %v632_v35  ;;  %v668_v13 = vld [vmem:[#allocation3 + $0x168] sm:$0xff]  ;;  %v667_v8 = vld [vmem:[#allocation3 + $0x160] sm:$0xff]  ;;  %v670_v1 = vld [vmem:[#allocation3 + $0x178] sm:$0xff] }
 0x29d   :  { %v669_v12 = vld [vmem:[#allocation3 + $0x170] sm:$0xff] }
 0x29e   :  { %v672_v21 = vld [vmem:[#allocation13 + $0x1] ss:$8 sm:$0x3] }
 0x29f   :  { %693 = vmatpush1.bf16.msra.mxu0 %v631_v36  ;;  %v677_v2 = vrot.slane %v672_v21, %v2938_v37  ;;  %v681_v20 = vrot.slane %v672_v21, %v2939_v41 }
 0x2a0   :  { %694 = vmatprep.subr.bf16.mxu0 %v634_v38 }
 0x2a3   :  { %695 = vmatpush1.bf16.msra.mxu0 %v633_v39 }
 0x2a4   :  { %696 = vmatprep.subr.bf16.mxu0 %v636_v40 }
 0x2a7   :  { %697 = vmatpush1.bf16.msra.mxu0 %v635_v42 }
 0x2a8   :  { %698 = vmatprep.subr.bf16.mxu0 %v638_v43 }
 0x2ab   :  { %699 = vmatpush1.bf16.msra.mxu0 %v637_v44 }
 0x2ac   :  { %700 = vmatprep.subr.bf16.mxu0 %v640_v45 }
 0x2af   :  { %701 = vmatpush1.bf16.msra.mxu0 %v639_v15 }
 0x2b0   :  { %702 = vmatprep.subr.bf16.mxu0 %v642_v46 }
 0x2b3   :  { %703 = vmatpush1.bf16.msra.mxu0 %v641_v47 }
 0x2b4   :  { %704 = vmatprep.subr.bf16.mxu0 %v644_v48 }
 0x2b7   :  { %705 = vmatpush1.bf16.msra.mxu0 %v643_v49 }
 0x2b8   :  { %706 = vmatprep.subr.bf16.mxu0 %v646_v50 }
 0x2bb   :  { %707 = vmatpush1.bf16.msra.mxu0 %v645_v51 }
 0x2bc   :  { %708 = vmatprep.subr.bf16.mxu0 %v648_v52 }
 0x2bf   :  { %709 = vmatpush1.bf16.msra.mxu0 %v647_v53 }
 0x2c0   :  { %710 = vmatprep.subr.bf16.mxu0 %v650_v54 }
 0x2c3   :  { %711 = vmatpush1.bf16.msra.mxu0 %v649_v55 }
 0x2c4   :  { %712 = vmatprep.subr.bf16.mxu0 %v652_v56 }
 0x2c7   :  { %713 = vmatpush1.bf16.msra.mxu0 %v651_v57 }
 0x2c8   :  { %714 = vmatprep.subr.bf16.mxu0 %v654_v58 }
 0x2cb   :  { %715 = vmatpush1.bf16.msra.mxu0 %v653_v59 }
 0x2cc   :  { %725 = vmatprep.subr.bf16.mxu0 %v656_v60 }
 0x2ce   :  { %717 = vmatmul.mubr.bf16.vlgmr.msra.gmra.mrb[8].mxu0 %v620_v61 }
 0x2cf   :  { %726 = vmatpush1.bf16.msra.mxu0 %v655_v62  ;;  %757 = vmatprep.mubr.bf16.mxu0 %v2381_v0 }
 0x2d0   :  { %727 = vmatprep.subr.bf16.mxu0 %v658_v63 }
 0x2d3   :  { %728 = vmatpush1.bf16.msra.mxu0 %v657_v5 }
 0x2d4   :  { %729 = vmatprep.subr.bf16.mxu0 %v660_v7 }
 0x2d7   :  { %730 = vmatpush1.bf16.msra.mxu0 %v659_v9 }
 0x2d8   :  { %731 = vmatprep.subr.bf16.mxu0 %v662_v10 }
 0x2db   :  { %732 = vmatpush1.bf16.msra.mxu0 %v661_v11 }
 0x2dc   :  { %733 = vmatprep.subr.bf16.mxu0 %v664_v4 }
 0x2df   :  { %734 = vmatpush1.bf16.msra.mxu0 %v663_v19 }
 0x2e0   :  { %735 = vmatprep.subr.bf16.mxu0 %v666_v6 }
 0x2e3   :  { %736 = vmatpush1.bf16.msra.mxu0 %v665_v14 }
 0x2e4   :  { %737 = vmatprep.subr.bf16.mxu0 %v668_v13 }
 0x2e7   :  { %738 = vmatpush1.bf16.msra.mxu0 %v667_v8 }
 0x2e8   :  { %739 = vmatprep.subr.bf16.mxu0 %v670_v1 }
 0x2eb   :  { %740 = vmatpush1.bf16.msra.mxu0 %v669_v12 }
 0x2ee   :  { %758 = vmatmul.mubr.bf16.vlgmr.msra.gmra.mrb[8].mxu0 %v622_v3 }
 0x3c1   :  { %v759_v24 = vpop.f32.mrb[8].mxu0 }
 0x3c2   :  { %v2094_v23 = vadd.f32 %v759_v24, %v677_v2  ;;  %v761_v18 = vpop.f32.mrb[9].mxu0 }
 0x3c3   :  { %v2095_v26 = vadd.f32 %v761_v18, %v681_v20  ;;  %v763_v27 = vpop.f32.mrb[10].mxu0 }
 0x3c4   :  { %v766_v29 = vmax.f32 %v2094_v23, 0.0  ;;  %v764_v32 = vpop.f32.mrb[11].mxu0 }
 0x3c5   :  { %v767_v16 = vmax.f32 %v2095_v26, 0.0 }
 0x3c6   :  { %v768_v17 = vsel %vm585_vm0, %v766_v29, 0.0  ;;  %v774_v22 = vmul.f32 %v766_v29, %v766_v29 }
 0x3c7   :  { %v769_v30 = vsel %vm585_vm0, %v767_v16, 0.0  ;;  %v775_v25 = vmul.f32 %v767_v16, %v767_v16 }
 0x3c8   :  { %v770_v28 = vadd.f32 %v769_v30, %v768_v17  ;;  %v776_v31 = vsel %vm585_vm0, %v774_v22, 0.0 }
 0x3c9   :  { %v777_v33 = vsel %vm585_vm0, %v775_v25, 0.0 }
 0x3ca   :  { %771 = vadd.xlane.f32.xlu0 %v770_v28  ;;  %v778_v34 = vadd.f32 %v777_v33, %v776_v31 }
 0x3ce   :  { %779 = vadd.xlane.f32.xlu0 %v778_v34 }
 0x457   :  { %v772_v35 = vpop.xlane.xlu0 %771 }
 0x458   :  { %v773_v36 = vmul.f32 0.00390625, %v772_v35 }
 0x45a   :  { %v782_v39 = vmul.f32 %v773_v36, %v773_v36  ;;  %v785_v45 = vsub.f32 %v766_v29, %v773_v36  ;;  %v786_v15 = vsub.f32 %v767_v16, %v773_v36 }
 0x45b   :  { %v780_v38 = vpop.xlane.xlu0 %779 }
 0x45c   :  { %v781_v40 = vmul.f32 0.00390625, %v780_v38 }
 0x45e   :  { %v783_v42 = vsub.f32 %v781_v40, %v782_v39 }
 0x460   :  { %v784_v43 = vmax.f32 %v783_v42, 0.0 }
 0x462   :  { %v787_v44 = vadd.f32 1e-05, %v784_v43 }
 0x464   :  { %2156 = vrsqrt.f32 %v787_v44 }
 0x46e   :  { %v2157_v46 = vpop.eup %2156 }
 0x46f   :  { %v2787_v47 = vmul.f32 %v2157_v46, %v785_v45  ;;  %v790_v48 = vmul.f32 %v2157_v46, %v786_v15 }
 0x470   :  { %2340 = dma.done.wait [#allocation7 + $0x3], 4096 }
 0x471   :  { %2341 = vsyncadd [#allocation7 + $0x3], 4294963200  ;;  %v795_v49 = vpack.c.bf16 %v790_v48, %v790_v48  ;;  %v797_v50 = vld [vmem:[#allocation4 + $0x8] sm:$0xff]  ;;  %v796_v51 = vld [vmem:[#allocation4] sm:$0xff]  ;;  %v794_v24 = vpack.c.bf16 %v2787_v47, %v2787_v47 }
 0x472   :  { %v799_v52 = vld [vmem:[#allocation4 + $0x18] sm:$0xff]  ;;  %841 = vmatprep.subr.bf16.mxu1 %v797_v50  ;;  %v798_v53 = vld [vmem:[#allocation4 + $0x10] sm:$0xff]  ;;  %v801_v54 = vld [vmem:[#allocation4 + $0x28] sm:$0xff] }
 0x473   :  { %873 = vmatprep.mubr.bf16.mxu1 %v795_v49  ;;  %842 = vmatpush1.bf16.msra.mxu1 %v796_v51  ;;  %v800_v55 = vld [vmem:[#allocation4 + $0x20] sm:$0xff]  ;;  %v803_v56 = vld [vmem:[#allocation4 + $0x38] sm:$0xff]  ;;  %v802_v57 = vld [vmem:[#allocation4 + $0x30] sm:$0xff] }
 0x474   :  { %843 = vmatprep.subr.bf16.mxu1 %v799_v52  ;;  %v805_v58 = vld [vmem:[#allocation4 + $0x48] sm:$0xff]  ;;  %v804_v59 = vld [vmem:[#allocation4 + $0x40] sm:$0xff]  ;;  %v807_v60 = vld [vmem:[#allocation4 + $0x58] sm:$0xff] }
 0x475   :  { %v806_v61 = vld [vmem:[#allocation4 + $0x50] sm:$0xff]  ;;  %v809_v62 = vld [vmem:[#allocation4 + $0x68] sm:$0xff]  ;;  %v808_v63 = vld [vmem:[#allocation4 + $0x60] sm:$0xff] }
 0x476   :  { %v811_v0 = vld [vmem:[#allocation4 + $0x78] sm:$0xff]  ;;  %v810_v5 = vld [vmem:[#allocation4 + $0x70] sm:$0xff]  ;;  %v813_v7 = vld [vmem:[#allocation4 + $0x88] sm:$0xff] }
 0x477   :  { %844 = vmatpush1.bf16.msra.mxu1 %v798_v53  ;;  %v812_v9 = vld [vmem:[#allocation4 + $0x80] sm:$0xff]  ;;  %v815_v10 = vld [vmem:[#allocation4 + $0x98] sm:$0xff]  ;;  %v814_v11 = vld [vmem:[#allocation4 + $0x90] sm:$0xff] }
 0x478   :  { %845 = vmatprep.subr.bf16.mxu1 %v801_v54  ;;  %v817_v4 = vld [vmem:[#allocation4 + $0xa8] sm:$0xff]  ;;  %v816_v19 = vld [vmem:[#allocation4 + $0xa0] sm:$0xff]  ;;  %v819_v6 = vld [vmem:[#allocation4 + $0xb8] sm:$0xff] }
 0x479   :  { %v818_v14 = vld [vmem:[#allocation4 + $0xb0] sm:$0xff]  ;;  %v821_v13 = vld [vmem:[#allocation4 + $0xc8] sm:$0xff]  ;;  %v820_v8 = vld [vmem:[#allocation4 + $0xc0] sm:$0xff] }
 0x47a   :  { %v823_v1 = vld [vmem:[#allocation4 + $0xd8] sm:$0xff]  ;;  %v822_v12 = vld [vmem:[#allocation4 + $0xd0] sm:$0xff]  ;;  %v825_v3 = vld [vmem:[#allocation4 + $0xe8] sm:$0xff] }
 0x47b   :  { %846 = vmatpush1.bf16.msra.mxu1 %v800_v55  ;;  %v824_v21 = vld [vmem:[#allocation4 + $0xe0] sm:$0xff]  ;;  %v827_v2 = vld [vmem:[#allocation4 + $0xf8] sm:$0xff]  ;;  %v826_v20 = vld [vmem:[#allocation4 + $0xf0] sm:$0xff] }
 0x47c   :  { %847 = vmatprep.subr.bf16.mxu1 %v803_v56  ;;  %v829_v23 = vld [vmem:[#allocation13 + $0x2] ss:$8 sm:$0x3] }
 0x47d   :  { %v834_v18 = vrot.slane %v829_v23, %v2938_v37  ;;  %v838_v26 = vrot.slane %v829_v23, %v2939_v41 }
 0x47f   :  { %848 = vmatpush1.bf16.msra.mxu1 %v802_v57 }
 0x480   :  { %849 = vmatprep.subr.bf16.mxu1 %v805_v58 }
 0x483   :  { %850 = vmatpush1.bf16.msra.mxu1 %v804_v59 }
 0x484   :  { %851 = vmatprep.subr.bf16.mxu1 %v807_v60 }
 0x487   :  { %852 = vmatpush1.bf16.msra.mxu1 %v806_v61 }
 0x488   :  { %853 = vmatprep.subr.bf16.mxu1 %v809_v62 }
 0x48b   :  { %854 = vmatpush1.bf16.msra.mxu1 %v808_v63 }
 0x48c   :  { %855 = vmatprep.subr.bf16.mxu1 %v811_v0 }
 0x48f   :  { %856 = vmatpush1.bf16.msra.mxu1 %v810_v5 }
 0x490   :  { %857 = vmatprep.subr.bf16.mxu1 %v813_v7 }
 0x493   :  { %858 = vmatpush1.bf16.msra.mxu1 %v812_v9 }
 0x494   :  { %859 = vmatprep.subr.bf16.mxu1 %v815_v10 }
 0x497   :  { %860 = vmatpush1.bf16.msra.mxu1 %v814_v11 }
 0x498   :  { %861 = vmatprep.subr.bf16.mxu1 %v817_v4 }
 0x49b   :  { %862 = vmatpush1.bf16.msra.mxu1 %v816_v19 }
 0x49c   :  { %863 = vmatprep.subr.bf16.mxu1 %v819_v6 }
 0x49f   :  { %864 = vmatpush1.bf16.msra.mxu1 %v818_v14 }
 0x4a0   :  { %865 = vmatprep.subr.bf16.mxu1 %v821_v13 }
 0x4a3   :  { %866 = vmatpush1.bf16.msra.mxu1 %v820_v8 }
 0x4a4   :  { %867 = vmatprep.subr.bf16.mxu1 %v823_v1 }
 0x4a7   :  { %868 = vmatpush1.bf16.msra.mxu1 %v822_v12 }
 0x4a8   :  { %869 = vmatprep.subr.bf16.mxu1 %v825_v3 }
 0x4ab   :  { %870 = vmatpush1.bf16.msra.mxu1 %v824_v21 }
 0x4ac   :  { %871 = vmatprep.subr.bf16.mxu1 %v827_v2 }
 0x4af   :  { %872 = vmatpush1.bf16.msra.mxu1 %v826_v20 }
 0x4b2   :  { %874 = vmatmul.mubr.bf16.vlgmr.msra.gmra.mrb[8].mxu1 %v794_v24 }
 0x585   :  { %v875_v27 = vpop.f32.mrb[8].mxu1 }
 0x586   :  { %v876_v29 = vadd.f32 %v875_v27, %v834_v18  ;;  %v877_v32 = vpop.f32.mrb[9].mxu1 }
 0x587   :  { %v878_v16 = vadd.f32 %v877_v32, %v838_v26  ;;  %v879_v17 = vpop.f32.mrb[10].mxu1 }
 0x588   :  { %v882_v22 = vmax.f32 %v876_v29, 0.0  ;;  %v880_v30 = vpop.f32.mrb[11].mxu1 }
 0x589   :  { %v883_v25 = vmax.f32 %v878_v16, 0.0 }
 0x58a   :  { %v884_v28 = vsel %vm585_vm0, %v882_v22, 0.0  ;;  %v890_v31 = vmul.f32 %v882_v22, %v882_v22 }
 0x58b   :  { %v885_v33 = vsel %vm585_vm0, %v883_v25, 0.0  ;;  %v891_v34 = vmul.f32 %v883_v25, %v883_v25 }
 0x58c   :  { %v886_v35 = vadd.f32 %v885_v33, %v884_v28  ;;  %v892_v36 = vsel %vm585_vm0, %v890_v31, 0.0 }
 0x58d   :  { %v893_v37 = vsel %vm585_vm0, %v891_v34, 0.0 }
 0x58e   :  { %887 = vadd.xlane.f32.xlu0 %v886_v35  ;;  %v894_v41 = vadd.f32 %v893_v37, %v892_v36 }
 0x592   :  { %895 = vadd.xlane.f32.xlu0 %v894_v41 }
 0x61b   :  { %v888_v38 = vpop.xlane.xlu0 %887 }
 0x61c   :  { %v889_v39 = vmul.f32 0.00390625, %v888_v38 }
 0x61e   :  { %v898_v42 = vmul.f32 %v889_v39, %v889_v39  ;;  %v901_v46 = vsub.f32 %v882_v22, %v889_v39  ;;  %v902_v47 = vsub.f32 %v883_v25, %v889_v39 }
 0x61f   :  { %v896_v40 = vpop.xlane.xlu0 %895 }
 0x620   :  { %v897_v43 = vmul.f32 0.00390625, %v896_v40 }
 0x622   :  { %v899_v44 = vsub.f32 %v897_v43, %v898_v42 }
 0x624   :  { %v900_v45 = vmax.f32 %v899_v44, 0.0 }
 0x626   :  { %v903_v15 = vadd.f32 1e-05, %v900_v45 }
 0x628   :  { %2158 = vrsqrt.f32 %v903_v15 }
 0x632   :  { %v2159_v48 = vpop.eup %2158 }
 0x633   :  { %v905_v49 = vmul.f32 %v2159_v48, %v901_v46  ;;  %v906_v50 = vmul.f32 %v2159_v48, %v902_v47 }
 0x634   :  { %2342 = dma.done.wait [#allocation7 + $0x4], 2048 }
 0x635   :  { %2343 = vsyncadd [#allocation7 + $0x4], 4294965248  ;;  %v911_v51 = vpack.c.bf16 %v906_v50, %v906_v50  ;;  %v920_v52 = vld [vmem:[#allocation5 + $0x40] sm:$0xff]  ;;  %v921_v54 = vld [vmem:[#allocation5 + $0x48] sm:$0xff]  ;;  %v910_v10 = vpack.c.bf16 %v905_v49, %v905_v49 }
 0x636   :  { %v912_v53 = vld [vmem:[#allocation5] sm:$0xff]  ;;  %1728 = vmatprep.subr.bf16.mxu1 %v920_v52  ;;  %v913_v55 = vld [vmem:[#allocation5 + $0x8] sm:$0xff]  ;;  %v922_v56 = vld [vmem:[#allocation5 + $0x50] sm:$0xff] }
 0x637   :  { %961 = vmatprep.mubr.bf16.mxu1 %v911_v51  ;;  %1729 = vmatpush3.bf16.msra.mxu1 %v912_v53  ;;  %v914_v57 = vld [vmem:[#allocation5 + $0x10] sm:$0xff]  ;;  %v923_v58 = vld [vmem:[#allocation5 + $0x58] sm:$0xff]  ;;  %v924_v60 = vld [vmem:[#allocation5 + $0x60] sm:$0xff] }
 0x638   :  { %1730 = vmatprep.subr.bf16.mxu1 %v921_v54  ;;  %v915_v59 = vld [vmem:[#allocation5 + $0x18] sm:$0xff]  ;;  %v916_v61 = vld [vmem:[#allocation5 + $0x20] sm:$0xff]  ;;  %v925_v62 = vld [vmem:[#allocation5 + $0x68] sm:$0xff] }
 0x639   :  { %v917_v63 = vld [vmem:[#allocation5 + $0x28] sm:$0xff]  ;;  %v926_v0 = vld [vmem:[#allocation5 + $0x70] sm:$0xff]  ;;  %v927_v7 = vld [vmem:[#allocation5 + $0x78] sm:$0xff] }
 0x63a   :  { %v918_v5 = vld [vmem:[#allocation5 + $0x30] sm:$0xff]  ;;  %v919_v9 = vld [vmem:[#allocation5 + $0x38] sm:$0xff]  ;;  %v928_v4 = vld [vmem:[#allocation13 + $0x3] ss:$0 sm:$0xff] }
 0x63b   :  { %1731 = vmatpush3.bf16.msra.mxu1 %v913_v55 }
 0x63c   :  { %1732 = vmatprep.subr.bf16.mxu1 %v922_v56 }
 0x63f   :  { %1733 = vmatpush3.bf16.msra.mxu1 %v914_v57 }
 0x640   :  { %1734 = vmatprep.subr.bf16.mxu1 %v923_v58 }
 0x643   :  { %1735 = vmatpush3.bf16.msra.mxu1 %v915_v59 }
 0x644   :  { %1736 = vmatprep.subr.bf16.mxu1 %v924_v60 }
 0x647   :  { %1737 = vmatpush3.bf16.msra.mxu1 %v916_v61 }
 0x648   :  { %1738 = vmatprep.subr.bf16.mxu1 %v925_v62 }
 0x64b   :  { %1739 = vmatpush3.bf16.msra.mxu1 %v917_v63 }
 0x64c   :  { %1740 = vmatprep.subr.bf16.mxu1 %v926_v0 }
 0x64f   :  { %1741 = vmatpush3.bf16.msra.mxu1 %v918_v5 }
 0x650   :  { %1742 = vmatprep.subr.bf16.mxu1 %v927_v7 }
 0x653   :  { %1743 = vmatpush3.bf16.msra.mxu1 %v919_v9 }
 0x656   :  { %962 = vmatmul.mubr.bf16.vlgmr.msra.gmra.mrb[12].mxu1 %v910_v10 }
 0x729   :  { %v1744_v11 = vpop.f32.mrb[12].mxu1 }
 0x72a   :  { %v1745_v19 = vpop.f32.mrb[13].mxu1 }
 0x72b   :  { %v1746_v6 = vadd.f32 %v1745_v19, %v1744_v11  ;;  %v1747_v14 = vpop.f32.mrb[14].mxu1 }
 0x72c   :  { %v1748_v13 = vpop.f32.mrb[15].mxu1 }
 0x72d   :  { %v964_v8 = vadd.f32 %v1746_v6, %v928_v4 }
 0x72f   :  { %v969_v1 = vmax.f32 %v964_v8, 0.0 }
 0x731   :  { %v970_v12 = vsel %vm585_vm0, %v969_v1, 0.0  ;;  %v974_v3 = vmul.f32 %v969_v1, %v969_v1 }
 0x732   :  { %971 = vadd.xlane.f32.xlu0 %v970_v12 }
 0x733   :  { %v975_v21 = vsel %vm585_vm0, %v974_v3, 0.0 }
 0x736   :  { %976 = vadd.xlane.f32.xlu0 %v975_v21 }
 0x7bf   :  { %v972_v2 = vpop.xlane.xlu0 %971 }
 0x7c0   :  { %v973_v20 = vmul.f32 0.0078125, %v972_v2 }
 0x7c2   :  { %v979_v23 = vmul.f32 %v973_v20, %v973_v20  ;;  %v982_v32 = vsub.f32 %v969_v1, %v973_v20 }
 0x7c3   :  { %v977_v24 = vpop.xlane.xlu0 %976 }
 0x7c4   :  { %v978_v18 = vmul.f32 0.0078125, %v977_v24 }
 0x7c6   :  { %v980_v26 = vsub.f32 %v978_v18, %v979_v23 }
 0x7c8   :  { %v981_v27 = vmax.f32 %v980_v26, 0.0 }
 0x7ca   :  { %v983_v29 = vadd.f32 1e-05, %v981_v27 }
 0x7cc   :  { %2160 = vrsqrt.f32 %v983_v29 }
 0x7d6   :  { %v2161_v16 = vpop.eup %2160 }
 0x7d7   :  { %v985_v17 = vmul.f32 %v2161_v16, %v982_v32 }
 0x7d8   :  { %2344 = dma.done.wait [#allocation7 + $0x5], 4096 }
 0x7d9   :  { %2345 = vsyncadd [#allocation7 + $0x5], 4294963200  ;;  %v2382_v22 = vmov 0.0   ;;  %vm2383_vm1 = vmmov 0   ;;  %v990_v30 = vld [vmem:[#allocation6] sm:$0xff]  ;;  %v998_v37 = vpack.c.bf16 %v985_v17, %v985_v17  ;;  %v1057_v41 = vld [vmem:[#allocation6 + $0x8] sm:$0xff] }
 0x7da   :  { %1837 = vmatprep.subr.bf16.mxu0 %v2382_v22  ;;  %1853 = vmatprep.mubr.msk.bf16.mxu0 %vm2383_vm1, %v2382_v22  ;;  %v991_v25 = vld [vmem:[#allocation6 + $0x20] sm:$0xff]  ;;  %v999_v38 = vld [vmem:[#allocation13 + $0x4] ss:$0 sm:$0xff]  ;;  %v1124_v9 = vld [vmem:[#allocation6 + $0x10] sm:$0xff]  ;;  %s2385_s7 = smov 126   ;;  %s2386_s8 = smov 127  }
 0x7db   :  { %1857 = vmatprep.subr.bf16.mxu1 %v2382_v22  ;;  %1873 = vmatprep.mubr.msk.bf16.mxu1 %vm2383_vm1, %v2382_v22  ;;  %v992_v28 = vld [vmem:[#allocation6 + $0x40] sm:$0xff]  ;;  %v1058_v48 = vld [vmem:[#allocation6 + $0x28] sm:$0xff]  ;;  %v1125_v3 = vld [vmem:[#allocation6 + $0x30] sm:$0xff]  ;;  %s2387_s27 = smov 125   ;;  %s2388_s3 = smov 123  }
 0x7dc   :  { %1838 = vmatpush3.bf16.msra.mxu0 %v990_v30  ;;  %v993_v31 = vld [vmem:[#allocation6 + $0x60] sm:$0xff]  ;;  %1858 = vmatpush3.bf16.msra.mxu1 %v1057_v41  ;;  %v1059_v49 = vld [vmem:[#allocation6 + $0x48] sm:$0xff]  ;;  %v1126_v21 = vld [vmem:[#allocation6 + $0x50] sm:$0xff]  ;;  %s2389_s28 = smov 124   ;;  %s2390_s29 = smov [#allocation16]  }
 0x7dd   :  { %1839 = vmatprep.subr.bf16.mxu0 %v2382_v22  ;;  %v994_v33 = vld [vmem:[#allocation6 + $0x80] sm:$0xff]  ;;  %1859 = vmatprep.subr.bf16.mxu1 %v2382_v22  ;;  %v1060_v50 = vld [vmem:[#allocation6 + $0x68] sm:$0xff]  ;;  %v1127_v2 = vld [vmem:[#allocation6 + $0x70] sm:$0xff]  ;;  %s1602_s5 = sshll.u32 %s2390_s29, 4  ;;  %s1603_s5 = int_to_ptr.vmem [resolvable:$true] %s1602_s5 }
 0x7de   :  { %v995_v34 = vld [vmem:[#allocation6 + $0xa0] sm:$0xff]  ;;  %v1061_v51 = vld [vmem:[#allocation6 + $0x88] sm:$0xff]  ;;  %v1128_v20 = vld [vmem:[#allocation6 + $0x90] sm:$0xff]  ;;  %s2284_s30 = scalar_lea.vmem %s1603_s5, 16  ;;  %s2288_s11 = scalar_lea.vmem %s1603_s5, 32 }
 0x7df   :  { %v996_v35 = vld [vmem:[#allocation6 + $0xc0] sm:$0xff]  ;;  %v1062_v52 = vld [vmem:[#allocation6 + $0xa8] sm:$0xff]  ;;  %v1129_v24 = vld [vmem:[#allocation6 + $0xb0] sm:$0xff]  ;;  %p2285_p12 = scmp.ne.s32.totalorder %s1603_s5, %s2284_s30  ;;  %p2289_p13 = scmp.lt.s32.totalorder %s1603_s5, %s1603_s5 }
 0x7e0   :  { %1840 = vmatpush3.bf16.msra.mxu0 %v991_v25  ;;  %v997_v36 = vld [vmem:[#allocation6 + $0xe0] sm:$0xff]  ;;  %1860 = vmatpush3.bf16.msra.mxu1 %v1058_v48  ;;  %v1063_v53 = vld [vmem:[#allocation6 + $0xc8] sm:$0xff]  ;;  %v1130_v23 = vld [vmem:[#allocation6 + $0xd0] sm:$0xff]  ;;  %p2290_p0 = scmp.lt.s32.totalorder %s2288_s11, %s2284_s30 }
 0x7e1   :  { %1841 = vmatprep.subr.bf16.mxu0 %v2382_v22  ;;  %1861 = vmatprep.subr.bf16.mxu1 %v2382_v22  ;;  %v1064_v54 = vld [vmem:[#allocation6 + $0xe8] sm:$0xff]  ;;  %v1131_v18 = vld [vmem:[#allocation6 + $0xf0] sm:$0xff]  ;;  %v1195_v48 = vld [vmem:[#allocation6 + $0x98] sm:$0xff] }
 0x7e2   :  { %v1066_v10 = vld [vmem:[#allocation13 + $0x5] ss:$0 sm:$0xff]  ;;  %p2291_p1 = por %p2290_p0, %p2289_p13 }
 0x7e4   :  { %1842 = vmatpush3.bf16.msra.mxu0 %v992_v28  ;;  %1862 = vmatpush3.bf16.msra.mxu1 %v1059_v49  ;;  %v1196_v49 = vld [vmem:[#allocation6 + $0xb8] sm:$0xff]  ;;  %p2292_p2 = pnand %p2291_p1, %p2285_p12 }
 0x7e5   :  { %1843 = vmatprep.subr.bf16.mxu0 %v2382_v22  ;;  %1863 = vmatprep.subr.bf16.mxu1 %v2382_v22 }
 0x7e8   :  { %1844 = vmatpush3.bf16.msra.mxu0 %v993_v31  ;;  %1864 = vmatpush3.bf16.msra.mxu1 %v1060_v50  ;;  %v1197_v50 = vld [vmem:[#allocation6 + $0xd8] sm:$0xff] }
 0x7e9   :  { %1845 = vmatprep.subr.bf16.mxu0 %v2382_v22  ;;  %1865 = vmatprep.subr.bf16.mxu1 %v2382_v22 }
 0x7ec   :  { %1846 = vmatpush3.bf16.msra.mxu0 %v994_v33  ;;  %1866 = vmatpush3.bf16.msra.mxu1 %v1061_v51  ;;  %v1198_v51 = vld [vmem:[#allocation6 + $0xf8] sm:$0xff] }
 0x7ed   :  { %1847 = vmatprep.subr.bf16.mxu0 %v2382_v22  ;;  %1867 = vmatprep.subr.bf16.mxu1 %v2382_v22 }
 0x7f0   :  { %1848 = vmatpush3.bf16.msra.mxu0 %v995_v34  ;;  %1868 = vmatpush3.bf16.msra.mxu1 %v1062_v52 }
 0x7f1   :  { %1849 = vmatprep.subr.bf16.mxu0 %v2382_v22  ;;  %1869 = vmatprep.subr.bf16.mxu1 %v2382_v22 }
 0x7f4   :  { %1850 = vmatpush3.bf16.msra.mxu0 %v996_v35  ;;  %1870 = vmatpush3.bf16.msra.mxu1 %v1063_v53  ;;  %v1191_v35 = vld [vmem:[#allocation6 + $0x18] sm:$0xff] }
 0x7f5   :  { %1851 = vmatprep.subr.bf16.mxu0 %v2382_v22  ;;  %1871 = vmatprep.subr.bf16.mxu1 %v2382_v22 }
 0x7f8   :  { %1852 = vmatpush3.bf16.msra.mxu0 %v997_v36  ;;  %1872 = vmatpush3.bf16.msra.mxu1 %v1064_v54  ;;  %v1192_v36 = vld [vmem:[#allocation6 + $0x38] sm:$0xff] }
 0x7f9   :  { %1877 = vmatprep.subr.bf16.mxu0 %v2382_v22  ;;  %1897 = vmatprep.subr.bf16.mxu1 %v2382_v22 }
 0x7fb   :  { %1854 = vmatmul.mubr.bf16.vlgmr.msra.gmra.mrb[12].mxu0 %v998_v37  ;;  %v1133_v37 = vld [vmem:[#allocation13 + $0x6] ss:$0 sm:$0xff] }
 0x7fc   :  { %1893 = vmatprep.mubr.msk.bf16.mxu0 %vm2383_vm1, %v2382_v22  ;;  %1878 = vmatpush3.bf16.msra.mxu0 %v1124_v9  ;;  %v2384_v9 = vmov 0.0|0.0  }
 0x7fd   :  { %1879 = vmatprep.subr.bf16.mxu0 %v2382_v22 }
 0x800   :  { %1880 = vmatpush3.bf16.msra.mxu0 %v1125_v3 }
 0x801   :  { %1881 = vmatprep.subr.bf16.mxu0 %v2382_v22 }
 0x804   :  { %1882 = vmatpush3.bf16.msra.mxu0 %v1126_v21 }
 0x805   :  { %1883 = vmatprep.subr.bf16.mxu0 %v2382_v22 }
 0x808   :  { %1884 = vmatpush3.bf16.msra.mxu0 %v1127_v2 }
 0x809   :  { %1885 = vmatprep.subr.bf16.mxu0 %v2382_v22 }
 0x80c   :  { %1886 = vmatpush3.bf16.msra.mxu0 %v1128_v20  ;;  %v1262_v20 = vld [vmem:[#allocation14 + $0x20] sm:$0xff] }
 0x80d   :  { %1887 = vmatprep.subr.bf16.mxu0 %v2382_v22 }
 0x810   :  { %1888 = vmatpush3.bf16.msra.mxu0 %v1129_v24  ;;  %v1263_v24 = vld [vmem:[#allocation14 + $0x28] sm:$0xff] }
 0x811   :  { %1889 = vmatprep.subr.bf16.mxu0 %v2382_v22 }
 0x814   :  { %1890 = vmatpush3.bf16.msra.mxu0 %v1130_v23  ;;  %v2029_v23 = vpack.c.bf16 %v1263_v24, %v1262_v20 }
 0x815   :  { %1891 = vmatprep.subr.bf16.mxu0 %v2382_v22 }
 0x818   :  { %1892 = vmatpush3.bf16.msra.mxu0 %v1131_v18  ;;  %v1264_v18 = vld [vmem:[#allocation14 + $0x30] sm:$0xff] }
 0x819   :  { %2022 = vmatprep.subr.bf16.mxu0 %v2384_v9 }
 0x8ce   :  { %v1034_v39 = vpop.f32.mrb[12].mxu0 }
 0x8cf   :  { %v1035_v40 = vadd.f32 %v1034_v39, %v999_v38  ;;  %v1855_v42 = vpop.f32.mrb[13].mxu0 }
 0x8d0   :  { %v1037_v43 = vpop.f32.mrb[14].mxu0 }
 0x8d1   :  { %v1040_v44 = vmax.f32 %v1035_v40, 0.0  ;;  %v1856_v45 = vpop.f32.mrb[15].mxu0 }
 0x8d3   :  { %v1041_v15 = vsel %vm585_vm0, %v1040_v44, 0.0  ;;  %v1045_v46 = vmul.f32 %v1040_v44, %v1040_v44 }
 0x8d4   :  { %1042 = vadd.xlane.f32.xlu0 %v1041_v15 }
 0x8d5   :  { %v1046_v47 = vsel %vm585_vm0, %v1045_v46, 0.0  ;;  %v1193_v46 = vld [vmem:[#allocation6 + $0x58] sm:$0xff] }
 0x8d8   :  { %1047 = vadd.xlane.f32.xlu0 %v1046_v47  ;;  %v1194_v47 = vld [vmem:[#allocation6 + $0x78] sm:$0xff] }
 0x961   :  { %v1043_v55 = vpop.xlane.xlu0 %1042 }
 0x962   :  { %v1044_v56 = vmul.f32 0.0078125, %v1043_v55 }
 0x964   :  { %v1050_v58 = vmul.f32 %v1044_v56, %v1044_v56  ;;  %v1053_v63 = vsub.f32 %v1040_v44, %v1044_v56 }
 0x965   :  { %v1048_v57 = vpop.xlane.xlu0 %1047 }
 0x966   :  { %v1049_v59 = vmul.f32 0.0078125, %v1048_v57 }
 0x968   :  { %v1051_v60 = vsub.f32 %v1049_v59, %v1050_v58 }
 0x96a   :  { %v1052_v61 = vmax.f32 %v1051_v60, 0.0 }
 0x96c   :  { %v1054_v62 = vadd.f32 1e-05, %v1052_v61 }
 0x96e   :  { %2162 = vrsqrt.f32 %v1054_v62 }
 0x978   :  { %v2163_v0 = vpop.eup %2162 }
 0x979   :  { %v1056_v5 = vmul.f32 %v2163_v0, %v1053_v63  ;;  %v1258_v0 = vld [vmem:[#allocation14] sm:$0xff] }
 0x97b   :  { %v1065_v7 = vpack.c.bf16 %v1056_v5, %v1056_v5  ;;  %v1259_v5 = vld [vmem:[#allocation14 + $0x8] sm:$0xff] }
 0x97d   :  { %1874 = vmatmul.mubr.bf16.vlgmr.msra.gmra.mrb[16].mxu1 %v1065_v7  ;;  %v1260_v7 = vld [vmem:[#allocation14 + $0x10] sm:$0xff] }
 0x97e   :  { %1913 = vmatprep.mubr.msk.bf16.mxu1 %vm2383_vm1, %v2382_v22  ;;  %1898 = vmatpush3.bf16.msra.mxu1 %v1191_v35  ;;  %v1273_v35 = vld [vmem:[#allocation14 + $0x78] sm:$0xff] }
 0x97f   :  { %1899 = vmatprep.subr.bf16.mxu1 %v2382_v22 }
 0x982   :  { %1900 = vmatpush3.bf16.msra.mxu1 %v1192_v36 }
 0x983   :  { %1901 = vmatprep.subr.bf16.mxu1 %v2382_v22 }
 0x986   :  { %1902 = vmatpush3.bf16.msra.mxu1 %v1193_v46 }
 0x987   :  { %1903 = vmatprep.subr.bf16.mxu1 %v2382_v22 }
 0x98a   :  { %1904 = vmatpush3.bf16.msra.mxu1 %v1194_v47  ;;  %v1363_v47 = vld [vmem:[#allocation14 + $0x80] sm:$0xff] }
 0x98b   :  { %1905 = vmatprep.subr.bf16.mxu1 %v2382_v22 }
 0x98e   :  { %1906 = vmatpush3.bf16.msra.mxu1 %v1195_v48  ;;  %v1364_v48 = vld [vmem:[#allocation14 + $0x88] sm:$0xff] }
 0x98f   :  { %1907 = vmatprep.subr.bf16.mxu1 %v2382_v22 }
 0x992   :  { %1908 = vmatpush3.bf16.msra.mxu1 %v1196_v49  ;;  %v1365_v49 = vld [vmem:[#allocation14 + $0x90] sm:$0xff] }
 0x993   :  { %1909 = vmatprep.subr.bf16.mxu1 %v2382_v22 }
 0x996   :  { %1910 = vmatpush3.bf16.msra.mxu1 %v1197_v50  ;;  %v2047_v50 = vpack.c.bf16 %v1364_v48, %v1363_v47  ;;  %v1476_v47 = vld [vmem:[#allocation14 + $0x140] sm:$0xff]  ;;  %v1477_v48 = vld [vmem:[#allocation14 + $0x148] sm:$0xff] }
 0x997   :  { %1911 = vmatprep.subr.bf16.mxu1 %v2382_v22 }
 0x99a   :  { %1912 = vmatpush3.bf16.msra.mxu1 %v1198_v51  ;;  %v1366_v51 = vld [vmem:[#allocation14 + $0x98] sm:$0xff] }
 0x99b   :  { %2046 = vmatprep.subr.bf16.mxu1 %v2384_v9 }
 0xa50   :  { %v1101_v11 = vpop.f32.mrb[16].mxu1 }
 0xa51   :  { %v1102_v4 = vadd.f32 %v1101_v11, %v1066_v10  ;;  %v1875_v19 = vpop.f32.mrb[17].mxu1  ;;  %v2023_v10 = vpack.c.bf16 %v1259_v5, %v1258_v0  ;;  %v1261_v11 = vld [vmem:[#allocation14 + $0x18] sm:$0xff] }
 0xa52   :  { %v1104_v6 = vpop.f32.mrb[18].mxu1  ;;  %v1200_v19 = vld [vmem:[#allocation13 + $0x7] ss:$0 sm:$0xff]  ;;  %v1370_v0 = vld [vmem:[#allocation14 + $0xb8] sm:$0xff] }
 0xa53   :  { %v1107_v14 = vmax.f32 %v1102_v4, 0.0  ;;  %v1876_v13 = vpop.f32.mrb[19].mxu1  ;;  %v2026_v4 = vpack.c.bf16 %v1261_v11, %v1260_v7  ;;  %v1371_v7 = vld [vmem:[#allocation14 + $0xc0] sm:$0xff] }
 0xa55   :  { %v1108_v8 = vsel %vm585_vm0, %v1107_v14, 0.0  ;;  %v1112_v1 = vmul.f32 %v1107_v14, %v1107_v14 }
 0xa56   :  { %1109 = vadd.xlane.f32.xlu1 %v1108_v8 }
 0xa57   :  { %v1113_v12 = vsel %vm585_vm0, %v1112_v1, 0.0 }
 0xa5a   :  { %1114 = vadd.xlane.f32.xlu1 %v1113_v12 }
 0xae3   :  { %v1110_v26 = vpop.xlane.xlu1 %1109 }
 0xae4   :  { %v1111_v27 = vmul.f32 0.0078125, %v1110_v26  ;;  %v1265_v26 = vld [vmem:[#allocation14 + $0x38] sm:$0xff] }
 0xae6   :  { %v1117_v32 = vmul.f32 %v1111_v27, %v1111_v27  ;;  %v1120_v28 = vsub.f32 %v1107_v14, %v1111_v27  ;;  %v2032_v27 = vpack.c.bf16 %v1265_v26, %v1264_v18 }
 0xae7   :  { %v1115_v29 = vpop.xlane.xlu1 %1114 }
 0xae8   :  { %v1116_v16 = vmul.f32 0.0078125, %v1115_v29  ;;  %v1266_v29 = vld [vmem:[#allocation14 + $0x40] sm:$0xff] }
 0xaea   :  { %v1118_v17 = vsub.f32 %v1116_v16, %v1117_v32  ;;  %v1267_v32 = vld [vmem:[#allocation14 + $0x48] sm:$0xff] }
 0xaeb   :  { %v2035_v16 = vpack.c.bf16 %v1267_v32, %v1266_v29 }
 0xaec   :  { %v1119_v30 = vmax.f32 %v1118_v17, 0.0  ;;  %v1268_v17 = vld [vmem:[#allocation14 + $0x50] sm:$0xff] }
 0xaee   :  { %v1121_v25 = vadd.f32 1e-05, %v1119_v30  ;;  %v1269_v30 = vld [vmem:[#allocation14 + $0x58] sm:$0xff] }
 0xaf0   :  { %2164 = vrsqrt.f32 %v1121_v25  ;;  %v2038_v25 = vpack.c.bf16 %v1269_v30, %v1268_v17  ;;  %v1468_v17 = vld [vmem:[#allocation14 + $0x100] sm:$0xff]  ;;  %v1469_v30 = vld [vmem:[#allocation14 + $0x108] sm:$0xff] }
 0xafa   :  { %v2165_v31 = vpop.eup %2164 }
 0xafb   :  { %v1123_v33 = vmul.f32 %v2165_v31, %v1120_v28  ;;  %v1270_v28 = vld [vmem:[#allocation14 + $0x60] sm:$0xff]  ;;  %v1271_v31 = vld [vmem:[#allocation14 + $0x68] sm:$0xff] }
 0xafd   :  { %v1132_v34 = vpack.c.bf16 %v1123_v33, %v1123_v33  ;;  %v2041_v33 = vpack.c.bf16 %v1271_v31, %v1270_v28  ;;  %v2071_v28 = vpack.c.bf16 %v1469_v30, %v1468_v17  ;;  %v1471_v31 = vld [vmem:[#allocation14 + $0x118] sm:$0xff] }
 0xaff   :  { %1894 = vmatmul.mubr.bf16.vlgmr.msra.gmra.mrb[16].mxu0 %v1132_v34  ;;  %v1272_v34 = vld [vmem:[#allocation14 + $0x70] sm:$0xff] }
 0xb00   :  { %1949 = vmatprep.mubr.msk.f32.mxu0 %vm2383_vm1, %v2382_v22  ;;  %2024 = vmatpush3.bf16.msra.mxu0 %v2023_v10  ;;  %v2044_v36 = vpack.c.bf16 %v1273_v35, %v1272_v34  ;;  %v1372_v10 = vld [vmem:[#allocation14 + $0xc8] sm:$0xff] }
 0xb01   :  { %2025 = vmatprep.subr.bf16.mxu0 %v2384_v9  ;;  %v2059_v11 = vpack.c.bf16 %v1372_v10, %v1371_v7  ;;  %v1379_v34 = vld [vmem:[#allocation13 + $0x19] ss:$0 sm:$0xff] }
 0xb04   :  { %2027 = vmatpush3.bf16.msra.mxu0 %v2026_v4  ;;  %v1373_v4 = vld [vmem:[#allocation14 + $0xd0] sm:$0xff] }
 0xb05   :  { %2028 = vmatprep.subr.bf16.mxu0 %v2384_v9 }
 0xb08   :  { %2030 = vmatpush3.bf16.msra.mxu0 %v2029_v23 }
 0xb09   :  { %2031 = vmatprep.subr.bf16.mxu0 %v2384_v9 }
 0xb0c   :  { %2033 = vmatpush3.bf16.msra.mxu0 %v2032_v27 }
 0xb0d   :  { %2034 = vmatprep.subr.bf16.mxu0 %v2384_v9 }
 0xb10   :  { %2036 = vmatpush3.bf16.msra.mxu0 %v2035_v16 }
 0xb11   :  { %2037 = vmatprep.subr.bf16.mxu0 %v2384_v9 }
 0xb14   :  { %2039 = vmatpush3.bf16.msra.mxu0 %v2038_v25  ;;  %v1470_v25 = vld [vmem:[#allocation14 + $0x110] sm:$0xff] }
 0xb15   :  { %2040 = vmatprep.subr.bf16.mxu0 %v2384_v9 }
 0xb18   :  { %2042 = vmatpush3.bf16.msra.mxu0 %v2041_v33  ;;  %v2074_v33 = vpack.c.bf16 %v1471_v31, %v1470_v25 }
 0xb19   :  { %2043 = vmatprep.subr.bf16.mxu0 %v2384_v9 }
 0xb1c   :  { %2045 = vmatpush3.bf16.msra.mxu0 %v2044_v36 }
 0xb1d   :  { %2070 = vmatprep.subr.bf16.mxu0 %v2384_v9 }
 0xbd2   :  { %v1168_v41 = vpop.f32.mrb[16].mxu0 }
 0xbd3   :  { %v1169_v38 = vadd.f32 %v1168_v41, %v1133_v37  ;;  %v1895_v39 = vpop.f32.mrb[17].mxu0 }
 0xbd4   :  { %v1171_v40 = vpop.f32.mrb[18].mxu0 }
 0xbd5   :  { %v1174_v42 = vmax.f32 %v1169_v38, 0.0  ;;  %v1896_v43 = vpop.f32.mrb[19].mxu0 }
 0xbd7   :  { %v1175_v44 = vsel %vm585_vm0, %v1174_v42, 0.0  ;;  %v1179_v45 = vmul.f32 %v1174_v42, %v1174_v42 }
 0xbd8   :  { %1176 = vadd.xlane.f32.xlu0 %v1175_v44 }
 0xbd9   :  { %v1180_v15 = vsel %vm585_vm0, %v1179_v45, 0.0 }
 0xbda   :  { %1181 = vadd.xlane.f32.xlu1 %v1180_v15 }
 0xc65   :  { %v1177_v52 = vpop.xlane.xlu0 %1176 }
 0xc66   :  { %v1178_v53 = vmul.f32 0.0078125, %v1177_v52  ;;  %v2050_v52 = vpack.c.bf16 %v1366_v51, %v1365_v49  ;;  %v2083_v49 = vpack.c.bf16 %v1477_v48, %v1476_v47  ;;  %v1479_v51 = vld [vmem:[#allocation14 + $0x158] sm:$0xff] }
 0xc67   :  { %v1182_v54 = vpop.xlane.xlu1 %1181 }
 0xc68   :  { %v1184_v55 = vmul.f32 %v1178_v53, %v1178_v53  ;;  %v1183_v56 = vmul.f32 0.0078125, %v1182_v54  ;;  %v1187_v60 = vsub.f32 %v1174_v42, %v1178_v53  ;;  %v1274_v53 = vld [vmem:[#allocation13 + $0x18] ss:$0 sm:$0xff] }
 0xc6a   :  { %v1185_v57 = vsub.f32 %v1183_v56, %v1184_v55 }
 0xc6c   :  { %v1186_v58 = vmax.f32 %v1185_v57, 0.0 }
 0xc6e   :  { %v1188_v59 = vadd.f32 1e-05, %v1186_v58 }
 0xc70   :  { %2166 = vrsqrt.f32 %v1188_v59 }
 0xc7a   :  { %v2167_v61 = vpop.eup %2166 }
 0xc7b   :  { %v1190_v62 = vmul.f32 %v2167_v61, %v1187_v60  ;;  %v1367_v60 = vld [vmem:[#allocation14 + $0xa0] sm:$0xff]  ;;  %v1368_v61 = vld [vmem:[#allocation14 + $0xa8] sm:$0xff] }
 0xc7d   :  { %v1199_v63 = vpack.c.bf16 %v1190_v62, %v1190_v62  ;;  %v2053_v62 = vpack.c.bf16 %v1368_v61, %v1367_v60 }
 0xc7f   :  { %1914 = vmatmul.mubr.bf16.vlgmr.msra.gmra.mrb[20].mxu1 %v1199_v63  ;;  %v1369_v63 = vld [vmem:[#allocation14 + $0xb0] sm:$0xff] }
 0xc80   :  { %1984 = vmatprep.mubr.msk.f32.mxu1 %vm2383_vm1, %v2382_v22  ;;  %2048 = vmatpush3.bf16.msra.mxu1 %v2047_v50  ;;  %v2056_v5 = vpack.c.bf16 %v1370_v0, %v1369_v63  ;;  %v1478_v50 = vld [vmem:[#allocation14 + $0x150] sm:$0xff] }
 0xc81   :  { %2049 = vmatprep.subr.bf16.mxu1 %v2384_v9 }
 0xc84   :  { %2051 = vmatpush3.bf16.msra.mxu1 %v2050_v52  ;;  %v2086_v52 = vpack.c.bf16 %v1479_v51, %v1478_v50 }
 0xc85   :  { %2052 = vmatprep.subr.bf16.mxu1 %v2384_v9 }
 0xc88   :  { %2054 = vmatpush3.bf16.msra.mxu1 %v2053_v62 }
 0xc89   :  { %2055 = vmatprep.subr.bf16.mxu1 %v2384_v9 }
 0xc8c   :  { %2057 = vmatpush3.bf16.msra.mxu1 %v2056_v5 }
 0xc8d   :  { %2058 = vmatprep.subr.bf16.mxu1 %v2384_v9 }
 0xc90   :  { %2060 = vmatpush3.bf16.msra.mxu1 %v2059_v11 }
 0xc91   :  { %2061 = vmatprep.subr.bf16.mxu1 %v2384_v9 }
 0xd52   :  { %v1235_v6 = vpop.f32.mrb[20].mxu1 }
 0xd53   :  { %v1236_v14 = vadd.f32 %v1235_v6, %v1200_v19  ;;  %v1915_v13 = vpop.f32.mrb[21].mxu1  ;;  %v1374_v19 = vld [vmem:[#allocation14 + $0xd8] sm:$0xff] }
 0xd54   :  { %v1238_v8 = vpop.f32.mrb[22].mxu1  ;;  %v2062_v6 = vpack.c.bf16 %v1374_v19, %v1373_v4  ;;  %v1376_v13 = vld [vmem:[#allocation14 + $0xe8] sm:$0xff] }
 0xd55   :  { %v1241_v1 = vmax.f32 %v1236_v14, 0.0  ;;  %v1916_v12 = vpop.f32.mrb[23].mxu1  ;;  %v1375_v14 = vld [vmem:[#allocation14 + $0xe0] sm:$0xff]  ;;  %v1484_v4 = vld [vmem:[#allocation13 + $0x1a] ss:$0 sm:$0xff] }
 0xd56   :  { %2063 = vmatpush3.bf16.msra.mxu1 %v2062_v6  ;;  %v2065_v8 = vpack.c.bf16 %v1376_v13, %v1375_v14  ;;  %v1378_v12 = vld [vmem:[#allocation14 + $0xf8] sm:$0xff] }
 0xd57   :  { %v1242_v3 = vsel %vm585_vm0, %v1241_v1, 0.0  ;;  %v1246_v21 = vmul.f32 %v1241_v1, %v1241_v1  ;;  %2064 = vmatprep.subr.bf16.mxu1 %v2384_v9 }
 0xd58   :  { %1243 = vadd.xlane.f32.xlu0 %v1242_v3 }
 0xd59   :  { %v1247_v2 = vsel %vm585_vm0, %v1246_v21, 0.0 }
 0xd5a   :  { %1248 = vadd.xlane.f32.xlu1 %v1247_v2  ;;  %2066 = vmatpush3.bf16.msra.mxu1 %v2065_v8 }
 0xd5b   :  { %2067 = vmatprep.subr.bf16.mxu1 %v2384_v9 }
 0xde5   :  { %v1244_v37 = vpop.xlane.xlu0 %1243 }
 0xde6   :  { %v1245_v41 = vmul.f32 0.015625, %v1244_v37 }
 0xde7   :  { %v1249_v38 = vpop.xlane.xlu1 %1248 }
 0xde8   :  { %v1251_v39 = vmul.f32 %v1245_v41, %v1245_v41  ;;  %v1250_v40 = vmul.f32 0.015625, %v1249_v38  ;;  %v1254_v45 = vsub.f32 %v1241_v1, %v1245_v41  ;;  %v1377_v1 = vld [vmem:[#allocation14 + $0xf0] sm:$0xff] }
 0xde9   :  { %v2068_v3 = vpack.c.bf16 %v1378_v12, %v1377_v1 }
 0xdea   :  { %v1252_v42 = vsub.f32 %v1250_v40, %v1251_v39 }
 0xdeb   :  { %2069 = vmatpush3.bf16.msra.mxu1 %v2068_v3 }
 0xdec   :  { %v1253_v43 = vmax.f32 %v1252_v42, 0.0  ;;  %v1472_v42 = vld [vmem:[#allocation14 + $0x120] sm:$0xff] }
 0xdee   :  { %v1255_v44 = vadd.f32 1e-05, %v1253_v43  ;;  %v1473_v43 = vld [vmem:[#allocation14 + $0x128] sm:$0xff] }
 0xdf0   :  { %2168 = vrsqrt.f32 %v1255_v44  ;;  %v2077_v44 = vpack.c.bf16 %v1473_v43, %v1472_v42 }
 0xdfa   :  { %v2169_v15 = vpop.eup %2168 }
 0xdfb   :  { %v1257_v46 = vmul.f32 %v2169_v15, %v1254_v45  ;;  %v1474_v45 = vld [vmem:[#allocation14 + $0x130] sm:$0xff]  ;;  %v1475_v15 = vld [vmem:[#allocation14 + $0x138] sm:$0xff] }
 0xdfd   :  { %1950 = vmatmul.mubr.f32.vlgmr.msra.gmra.mrb[20].mxu0 %v1257_v46  ;;  %v2080_v46 = vpack.c.bf16 %v1475_v15, %v1474_v45 }
 0xdfe   :  { %2019 = vmatprep.mubr.msk.f32.mxu0 %vm2383_vm1, %v2382_v22  ;;  %2072 = vmatpush3.bf16.msra.mxu0 %v2071_v28 }
 0xdff   :  { %2073 = vmatprep.subr.bf16.mxu0 %v2384_v9 }
 0xe02   :  { %2075 = vmatpush3.bf16.msra.mxu0 %v2074_v33 }
 0xe03   :  { %2076 = vmatprep.subr.bf16.mxu0 %v2384_v9 }
 0xe06   :  { %2078 = vmatpush3.bf16.msra.mxu0 %v2077_v44 }
 0xe07   :  { %2079 = vmatprep.subr.bf16.mxu0 %v2384_v9 }
 0xe0a   :  { %2081 = vmatpush3.bf16.msra.mxu0 %v2080_v46 }
 0xe0b   :  { %2082 = vmatprep.subr.bf16.mxu0 %v2384_v9 }
 0xe0e   :  { %2084 = vmatpush3.bf16.msra.mxu0 %v2083_v49 }
 0xe0f   :  { %2085 = vmatprep.subr.bf16.mxu0 %v2384_v9 }
 0xe12   :  { %2087 = vmatpush3.bf16.msra.mxu0 %v2086_v52 }
 0xe13   :  { %2088 = vmatprep.subr.bf16.mxu0 %v2384_v9 }
 0xed0   :  { %v1341_v54 = vpop.f32.mrb[20].mxu0 }
 0xed1   :  { %v1342_v55 = vadd.f32 %v1341_v54, %v1274_v53  ;;  %v1951_v56 = vpop.f32.mrb[21].mxu0  ;;  %v1480_v53 = vld [vmem:[#allocation14 + $0x160] sm:$0xff]  ;;  %v1481_v54 = vld [vmem:[#allocation14 + $0x168] sm:$0xff] }
 0xed2   :  { %v1482_v56 = vld [vmem:[#allocation14 + $0x170] sm:$0xff] }
 0xed3   :  { %v1345_v57 = vmax.f32 %v1342_v55, 0.0  ;;  %v2089_v55 = vpack.c.bf16 %v1481_v54, %v1480_v53 }
 0xed5   :  { %v1346_v58 = vsel %vm585_vm0, %v1345_v57, 0.0  ;;  %v1350_v22 = vmul.f32 %v1345_v57, %v1345_v57  ;;  %2090 = vmatpush3.bf16.msra.mxu0 %v2089_v55 }
 0xed6   :  { %1347 = vadd.xlane.f32.xlu0 %v1346_v58  ;;  %2091 = vmatprep.subr.bf16.mxu0 %v2384_v9 }
 0xed7   :  { %v1351_v59 = vsel %vm585_vm0, %v1350_v22, 0.0 }
 0xed8   :  { %1352 = vadd.xlane.f32.xlu1 %v1351_v59 }
 0xf63   :  { %v1348_v21 = vpop.xlane.xlu0 %1347 }
 0xf64   :  { %v1349_v2 = vmul.f32 0.03125, %v1348_v21 }
 0xf65   :  { %v1353_v20 = vpop.xlane.xlu1 %1352 }
 0xf66   :  { %v1355_v24 = vmul.f32 %v1349_v2, %v1349_v2  ;;  %v1354_v23 = vmul.f32 0.03125, %v1353_v20  ;;  %v1358_v29 = vsub.f32 %v1345_v57, %v1349_v2  ;;  %v1483_v57 = vld [vmem:[#allocation14 + $0x178] sm:$0xff] }
 0xf67   :  { %v2092_v58 = vpack.c.bf16 %v1483_v57, %v1482_v56 }
 0xf68   :  { %v1356_v18 = vsub.f32 %v1354_v23, %v1355_v24 }
 0xf69   :  { %2093 = vmatpush3.bf16.msra.mxu0 %v2092_v58 }
 0xf6a   :  { %v1357_v26 = vmax.f32 %v1356_v18, 0.0 }
 0xf6c   :  { %v1359_v27 = vadd.f32 1e-05, %v1357_v26 }
 0xf6e   :  { %2170 = vrsqrt.f32 %v1359_v27 }
 0xf78   :  { %v2171_v32 = vpop.eup %2170 }
 0xf79   :  { %v1361_v16 = vmul.f32 %v2171_v32, %v1358_v29 }
 0xf7b   :  { %1985 = vmatmul.mubr.f32.vlgmr.msra.gmra.mrb[24].mxu1 %v1361_v16 }
0x104e   :  { %v1446_v35 = vpop.f32.mrb[24].mxu1 }
0x104f   :  { %v1447_v36 = vadd.f32 %v1446_v35, %v1379_v34  ;;  %v1986_v37 = vpop.f32.mrb[25].mxu1 }
0x1051   :  { %v1450_v41 = vmax.f32 %v1447_v36, 0.0 }
0x1053   :  { %v1451_v38 = vsel %vm585_vm0, %v1450_v41, 0.0  ;;  %v1455_v39 = vmul.f32 %v1450_v41, %v1450_v41 }
0x1054   :  { %1452 = vadd.xlane.f32.xlu0 %v1451_v38 }
0x1055   :  { %v1456_v40 = vsel %vm585_vm0, %v1455_v39, 0.0 }
0x1056   :  { %1457 = vadd.xlane.f32.xlu1 %v1456_v40 }
0x10e1   :  { %v1453_v22 = vpop.xlane.xlu0 %1452 }
0x10e2   :  { %v1454_v59 = vmul.f32 0.0625, %v1453_v22 }
0x10e3   :  { %v1458_v60 = vpop.xlane.xlu1 %1457 }
0x10e4   :  { %v1460_v61 = vmul.f32 %v1454_v59, %v1454_v59  ;;  %v1459_v62 = vmul.f32 0.0625, %v1458_v60  ;;  %v1463_v7 = vsub.f32 %v1450_v41, %v1454_v59 }
0x10e6   :  { %v1461_v63 = vsub.f32 %v1459_v62, %v1460_v61 }
0x10e8   :  { %v1462_v0 = vmax.f32 %v1461_v63, 0.0 }
0x10ea   :  { %v1464_v5 = vadd.f32 1e-05, %v1462_v0 }
0x10ec   :  { %2172 = vrsqrt.f32 %v1464_v5 }
0x10f6   :  { %v2173_v10 = vpop.eup %2172 }
0x10f7   :  { %v1466_v11 = vmul.f32 %v2173_v10, %v1463_v7 }
0x10f9   :  { %2020 = vmatmul.mubr.f32.vlgmr.msra.gmra.mrb[22].mxu0 %v1466_v11 }
0x11cc   :  { %v1551_v19 = vpop.f32.mrb[22].mxu0 }
0x11cd   :  { %v1552_v6 = vadd.f32 %v1551_v19, %v1484_v4  ;;  %v2021_v14 = vpop.f32.mrb[23].mxu0 }
0x11cf   :  { %1555 = vst [vmem:[#allocation16] sm:$0x1] %v1552_v6  ;;  %1568 = vrot.lane.b32.xlu1 %v1552_v6, %s2385_s7  ;;  %1561 = vrot.lane.b32.xlu0 %v1552_v6, %s2386_s8  ;;  %2100 = vpush %v1552_v6 }
0x11d3   :  { %1574 = vrot.lane.b32.xlu1 %v1552_v6, %s2387_s27  ;;  %1588 = vrot.lane.b32.xlu0 %v1552_v6, %s2388_s3 }
0x11d7   :  { %1582 = vrot.lane.b32.xlu1 %v1552_v6, %s2389_s28 }
0x11d8   :  { %2295 = shalt.err (!%p2292_p2)
}
0x11d9   :  { %s2296_s15 = scalar_lea.hbm %s2919_s9, 16 }
0x11da   :  { %p2297_p3 = scmp.ne.s32.totalorder %s2919_s9, %s2296_s15  ;;  %p2300_p4 = scmp.lt.u32.totalorder %s2296_s15, %s2919_s9 }
0x11dc   :  { %p2302_p5 = pnand %p2300_p4, %p2297_p3 }
0x11de   :  { %2305 = shalt.err (!%p2302_p5)
}
0x11df   :  { %1605 = dma.vmem_to_hbm [thread:$0]  %s1603_s5, 16, %s2919_s9, [#allocation10]   ;;  %v2942_v24 = vld [vmem:[#allocation48_spill] sm:$0xff]  ;;  %v2943_v18 = vld [vmem:[#allocation49_spill] sm:$0xff]  ;;  %v2944_v27 = vld [vmem:[#allocation50_spill] sm:$0xff] }
0x11e0   :  { %v2945_v32 = vld [vmem:[#allocation47_spill] sm:$0xff]  ;;  %s2391_s23 = smov [#allocation17]  }
0x11e1   :  { %v2946_v28 = vld [vmem:[#allocation51_spill] sm:$0xff]  ;;  %s1612_s16 = sshll.u32 %s2391_s23, 4  ;;  %s1613_s16 = int_to_ptr.vmem [resolvable:$true] %s1612_s16 }
0x11e2   :  { %s2306_s20 = scalar_lea.vmem %s1613_s16, 64  ;;  %p2311_p7 = scmp.lt.s32.totalorder %s1613_s16, %s1613_s16 }
0x11e3   :  { %p2307_p6 = scmp.ne.s32.totalorder %s1613_s16, %s2306_s20  ;;  %p2312_p8 = scmp.lt.s32.totalorder %s2306_s20, %s2306_s20 }
0x11e5   :  { %p2313_p9 = por %p2312_p8, %p2311_p7 }
0x11e7   :  { %p2314_p10 = pnand %p2313_p9, %p2307_p6 }
0x1200   :  { %s2101_s18 = spop %2100 }
0x1201   :  { %v1558_v2 = vstv %s2101_s18 }
0x1202   :  { %v1560_v16 = vmul.f32 %v1558_v2, %v2945_v32 }
0x1241   :  { %v1569_v9 = vpop.permute.xlu1 %1568  ;;  %v1562_v13 = vpop.permute.xlu0 %1561 }
0x1242   :  { %2102 = vpush %v1562_v13 }
0x1243   :  { %2104 = vpush %v1569_v9 }
0x1245   :  { %v1575_v8 = vpop.permute.xlu1 %1574  ;;  %v1589_v12 = vpop.permute.xlu0 %1588 }
0x1246   :  { %2106 = vpush %v1575_v8 }
0x1249   :  { %v1583_v1 = vpop.permute.xlu1 %1582 }
0x124a   :  { %2108 = vpush %v1583_v1 }
0x124b   :  { %2110 = vpush %v1589_v12 }
0x1273   :  { %s2103_s4 = spop %2102 }
0x1274   :  { %s2105_s2 = spop %2104  ;;  %v1564_v3 = vstv %s2103_s4 }
0x1275   :  { %v1571_v21 = vstv %s2105_s2  ;;  %v1566_v23 = vmul.f32 %v1564_v3, %v2942_v24 }
0x1276   :  { %v1573_v26 = vmul.f32 %v1571_v21, %v2943_v18 }
0x1277   :  { %s2107_s21 = spop %2106  ;;  %v1567_v25 = vadd.f32 %v1566_v23, %v1560_v16 }
0x1278   :  { %v1577_v20 = vstv %s2107_s21 }
0x1279   :  { %v1579_v29 = vmul.f32 %v1577_v20, %v2944_v27 }
0x127b   :  { %v1580_v17 = vadd.f32 %v1579_v29, %v1573_v26  ;;  %s2109_s9 = spop %2108 }
0x127c   :  { %v1585_v30 = vstv %s2109_s9  ;;  %s2111_s26 = spop %2110 }
0x127d   :  { %v1587_v31 = vmul.f32 %v1585_v30, %v2946_v28  ;;  %v1591_v33 = vstv %s2111_s26  ;;  %v1581_v34 = vadd.f32 %v1580_v17, %v1567_v25 }
0x127f   :  { %v1593_v35 = vadd.f32 %v1591_v33, %v1587_v31 }
0x1281   :  { %v1594_v36 = vadd.f32 %v1593_v35, %v1581_v34 }
0x1283   :  { %1595 = vst [vmem:[#allocation17] sm:$0xf] %v1594_v36 }
0x1284   :  { %2317 = shalt.err (!%p2314_p10)
}
0x1285   :  { %s2318_s25 = scalar_lea.hbm %s2920_s10, 64 }
0x1286   :  { %p2319_p11 = scmp.ne.s32.totalorder %s2920_s10, %s2318_s25  ;;  %p2322_p12 = scmp.lt.u32.totalorder %s2318_s25, %s2920_s10 }
0x1288   :  { %p2324_p13 = pnand %p2322_p12, %p2319_p11 }
0x128a   :  { %2327 = shalt.err (!%p2324_p13)
}
0x128b   :  { %1615 = dma.vmem_to_hbm [thread:$0]  %s1613_s16, 64, %s2920_s10, [#allocation18]  }
0x128c   :  { %2346 = dma.done.wait [#allocation10], 16  }
0x128d   :  { %2347 = vsyncadd [#allocation10], 4294967280 }
0x128e   :  { %2348 = dma.done.wait [#allocation18], 64  }
0x128f   :  { %2349 = vsyncadd [#allocation18], 4294967232 }
0x1290   :  { %1622 = vsyncpa [#allocation9], 1 }
0x1291   :  { %1623 = vsyncpa [#allocation12], 1 }
0x1292   :  { %1624 = vsyncpa [#allocation15], 1 }
0x1293   :  { %1625 = vsyncpa [#allocation10], 1 }
0x1294   :  { %1626 = vsyncpa [#allocation18], 1 }
0x1295   :  { %1627 = vsyncmov [#allocation7] }
0x1298   :  { %s1628_s5 = vpop.sfrf %1627 }
0x1299   :  { %p1678_p0 = scmp.ne.s32.totalorder %s1628_s5, 0 }
0x129b   :  { %1632 = shalt.err (%p1678_p0)  }
0x129c   :  { %1634 = vsyncmov [#allocation7 + $0x1] }
0x129f   :  { %s1635_s30 = vpop.sfrf %1634 }
0x12a0   :  { %p1679_p1 = scmp.ne.s32.totalorder %s1635_s30, 0 }
0x12a2   :  { %1639 = shalt.err (%p1679_p1)  }
0x12a3   :  { %1641 = vsyncmov [#allocation7 + $0x2] }
0x12a6   :  { %s1642_s11 = vpop.sfrf %1641 }
0x12a7   :  { %p1680_p2 = scmp.ne.s32.totalorder %s1642_s11, 0 }
0x12a9   :  { %1646 = shalt.err (%p1680_p2)  }
0x12aa   :  { %1648 = vsyncmov [#allocation7 + $0x3] }
0x12ad   :  { %s1649_s10 = vpop.sfrf %1648 }
0x12ae   :  { %p1681_p3 = scmp.ne.s32.totalorder %s1649_s10, 0 }
0x12b0   :  { %1653 = shalt.err (%p1681_p3)  }
0x12b1   :  { %1655 = vsyncmov [#allocation7 + $0x4] }
0x12b4   :  { %s1656_s12 = vpop.sfrf %1655 }
0x12b5   :  { %p1682_p4 = scmp.ne.s32.totalorder %s1656_s12, 0 }
0x12b7   :  { %1660 = shalt.err (%p1682_p4)  }
0x12b8   :  { %1662 = vsyncmov [#allocation7 + $0x5] }
0x12bb   :  { %s1663_s13 = vpop.sfrf %1662 }
0x12bc   :  { %p1683_p5 = scmp.ne.s32.totalorder %s1663_s13, 0 }
0x12be   :  { %1667 = shalt.err (%p1683_p5)  }

</bundles_post_ra>
